<compile_context>
chip_gen: v5e
topology: v5e:2x2
jax: 0.10.0
libtpu: 0.0.40
codegen_flags: <defaults>
</compile_context>

<pallas_src>
import jax
import jax.numpy as jnp
from jax.experimental import pallas as pl
from jax.experimental.pallas import tpu as pltpu

# Logical layer sizes from the reference PyTorch module.
N_FEATURE = 102
N_H1 = 500
N_H2 = 500
N_H3 = 300
N_H4 = 300
N_OUT = 6

# Lane-aligned (multiple of 128) padded sizes.
P_FEATURE = 128
P_H1 = 512
P_H2 = 512
P_H3 = 384
P_H4 = 384
P_OUT = 128

MAX_BATCH_TILE = 1024  # safe on v5e/v6e/v7x with bf16 weights + f32 activations

# Static byte / flop accounting for vmem_limit_bytes and CostEstimate.
_WEIGHT_ELEMS = (P_FEATURE * P_H1 + P_H1 * P_H2 + P_H2 * P_H3
                 + P_H3 * P_H4 + P_H4 * P_OUT)          # 720_896
WEIGHT_BYTES = 2 * _WEIGHT_ELEMS                        # bf16 weights
BIAS_BYTES = 4 * (P_H1 + P_H2 + P_H3 + P_H4 + P_OUT)    # f32 biases
FLOPS_PER_ROW = 2 * _WEIGHT_ELEMS


def _round_up(n, m):
    return ((n + m - 1) // m) * m


def _pad2(a, rows, cols):
    """Zero-pad a 2-D array up to (rows, cols)."""
    return jnp.pad(a, ((0, rows - a.shape[0]), (0, cols - a.shape[1])))


def _choose_batch_tile(B):
    """Pick a sublane(8)-aligned batch tile that minimizes padded-row waste,
    is <= MAX_BATCH_TILE, and yields >= 2 grid steps when B > 128 so both
    v7x TensorCores get work."""
    if B <= 128:
        return max(8, _round_up(B, 8))
    best_tile, best_key = 128, None
    max_steps = -(-B // 128) + 1
    for steps in range(2, max_steps + 1):
        tile = _round_up(-(-B // steps), 8)
        if tile > MAX_BATCH_TILE:
            continue
        waste = steps * tile - B
        key = (waste, steps)          # least padding, then fewest grid steps
        if best_key is None or key < best_key:
            best_key, best_tile = key, tile
    return best_tile


def _vmem_limit_bytes(batch_tile):
    w = 2 * WEIGHT_BYTES                                   # double-buffered weights
    b = 2 * BIAS_BYTES
    io = 2 * batch_tile * P_FEATURE * 4 + 2 * batch_tile * P_OUT * 4
    act = 6 * batch_tile * P_H1 * 4                        # live intermediate headroom
    return min(int(w + b + io + act) + (8 << 20), 96 << 20)


def _mlp_kernel(x_ref,
                w1_ref, b1_ref,
                w2_ref, b2_ref,
                w3_ref, b3_ref,
                w4_ref, b4_ref,
                w5_ref, b5_ref,
                o_ref):
    """Fused MLP forward for one batch tile. bf16 MXU matmuls, f32 epilogue."""
    h = x_ref[...].astype(jnp.bfloat16)  # (TB, 128)

    def dense(h_bf16, w_ref, b_ref):
        # bf16 x bf16 -> f32 accumulate on the MXU, f32 bias add.
        return jnp.dot(h_bf16, w_ref[...],
                       preferred_element_type=jnp.float32) + b_ref[...]

    h = jnp.maximum(dense(h, w1_ref, b1_ref), 0.0).astype(jnp.bfloat16)
    h = jnp.maximum(dense(h, w2_ref, b2_ref), 0.0).astype(jnp.bfloat16)
    h = jnp.maximum(dense(h, w3_ref, b3_ref), 0.0).astype(jnp.bfloat16)
    h = jnp.maximum(dense(h, w4_ref, b4_ref), 0.0).astype(jnp.bfloat16)
    logits = dense(h, w5_ref, b5_ref)  # (TB, 128) f32

    # Only the first N_OUT logit columns are real; exclude the zero-padded
    # columns from the softmax reduction by masking them to -inf.
    col = jax.lax.broadcasted_iota(jnp.int32, logits.shape, 1)
    logits = jnp.where(col < N_OUT, logits, -jnp.inf)

    # Numerically stable softmax over dim=1 (matches torch.nn.Softmax(dim=1)).
    m = jnp.max(logits, axis=-1, keepdims=True)
    e = jnp.exp(logits - m)
    s = jnp.sum(e, axis=-1, keepdims=True)
    # EUP approximate reciprocal + one Newton step (f32-level accuracy).
    inv = pl.reciprocal(s, approx=True)
    inv = inv * (2.0 - s * inv)
    o_ref[...] = (e * inv).astype(o_ref.dtype)


def prepare_params(params):
    """One-time lane-aligned padding + bf16 cast of the weights (f32 biases).
    Call ONCE after init/training; the per-call forward only pads x."""
    def pw(w, r, c):
        return _pad2(w.astype(jnp.float32), r, c).astype(jnp.bfloat16)

    def pb(b, c):
        return _pad2(b.astype(jnp.float32), 1, c)

    return {
        "w1": pw(params["w1"], P_FEATURE, P_H1), "b1": pb(params["b1"], P_H1),
        "w2": pw(params["w2"], P_H1, P_H2),      "b2": pb(params["b2"], P_H2),
        "w3": pw(params["w3"], P_H2, P_H3),      "b3": pb(params["b3"], P_H3),
        "w4": pw(params["w4"], P_H3, P_H4),      "b4": pb(params["b4"], P_H4),
        "w5": pw(params["w5"], P_H4, P_OUT),     "b5": pb(params["b5"], P_OUT),
    }


@jax.jit
def net_forward(x, padded):
    """x: (B, 102) f32.  padded: output of prepare_params()."""
    B = x.shape[0]

    batch_tile = _choose_batch_tile(B)
    b_pad = _round_up(B, batch_tile)
    grid = (b_pad // batch_tile,)

    # Only the activations are padded per call (weights were padded once).
    xp = _pad2(x.astype(jnp.float32), b_pad, P_FEATURE)

    def full_spec(shape):
        # whole array as a single block, re-used for every batch tile
        return pl.BlockSpec(shape, lambda i: tuple(0 for _ in shape))

    in_specs = [
        pl.BlockSpec((batch_tile, P_FEATURE), lambda i: (i, 0)),   # x
        full_spec((P_FEATURE, P_H1)), full_spec((1, P_H1)),
        full_spec((P_H1, P_H2)),      full_spec((1, P_H2)),
        full_spec((P_H2, P_H3)),      full_spec((1, P_H3)),
        full_spec((P_H3, P_H4)),      full_spec((1, P_H4)),
        full_spec((P_H4, P_OUT)),     full_spec((1, P_OUT)),
    ]
    # Lane-dense (128-wide) output block; real logits live in columns [:6].
    out_spec = pl.BlockSpec((batch_tile, P_OUT), lambda i: (i, 0))

    cost = pl.CostEstimate(
        flops=int(b_pad * FLOPS_PER_ROW),
        transcendentals=int(b_pad * (P_OUT + 1)),
        bytes_accessed=int(WEIGHT_BYTES + BIAS_BYTES
                           + b_pad * P_FEATURE * 4 + b_pad * P_OUT * 4),
    )

    out_padded = pl.pallas_call(
        _mlp_kernel,
        out_shape=jax.ShapeDtypeStruct((b_pad, P_OUT), jnp.float32),
        grid_spec=pltpu.PrefetchScalarGridSpec(
            num_scalar_prefetch=0,
            grid=grid,
            in_specs=in_specs,
            out_specs=out_spec,
        ),
        compiler_params=pltpu.CompilerParams(
            dimension_semantics=("parallel",),
            vmem_limit_bytes=_vmem_limit_bytes(batch_tile),
        ),
        cost_estimate=cost,
    )(xp,
      padded["w1"], padded["b1"], padded["w2"], padded["b2"],
      padded["w3"], padded["b3"], padded["w4"], padded["b4"],
      padded["w5"], padded["b5"])

    return out_padded[:B, :N_OUT]


def init_params(key):
    """Deterministic init mirroring torch.nn.Linear default:
    U(-1/sqrt(fan_in), 1/sqrt(fan_in)) for both weight and bias."""
    sizes = [(N_FEATURE, N_H1), (N_H1, N_H2), (N_H2, N_H3),
             (N_H3, N_H4), (N_H4, N_OUT)]
    params = {}
    keys = jax.random.split(key, 2 * len(sizes))
    for li, (fin, fout) in enumerate(sizes):
        bound = 1.0 / (fin ** 0.5)
        wk, bk = keys[2 * li], keys[2 * li + 1]
        params[f"w{li+1}"] = jax.random.uniform(
            wk, (fin, fout), jnp.float32, minval=-bound, maxval=bound)
        params[f"b{li+1}"] = jax.random.uniform(
            bk, (1, fout), jnp.float32, minval=-bound, maxval=bound)
    return params


def reference_forward(x, params):
    """Pure-JAX f32 reference (unpadded) for correctness checking."""
    h = x
    for li in range(1, 5):
        h = jnp.maximum(h @ params[f"w{li}"] + params[f"b{li}"], 0.0)
    logits = h @ params["w5"] + params["b5"]
    return jax.nn.softmax(logits, axis=1)


if __name__ == "__main__":
    key = jax.random.PRNGKey(0)
    pkey, xkey = jax.random.split(key)

    params = init_params(pkey)
    padded = prepare_params(params)          # one-time pad + bf16 cast

    # Small demo batch (single-tile path).
    B = 16
    x = jax.random.normal(xkey, (B, N_FEATURE), jnp.float32)
    out = jax.block_until_ready(net_forward(x, padded))
    ref = reference_forward(x, params)
    assert out.shape == (B, N_OUT)
    assert jnp.allclose(jnp.sum(out, axis=1), 1.0, atol=1e-3)
    # bf16 MXU matmuls vs f32 reference: relaxed tolerance.
    assert jnp.allclose(out, ref, atol=2e-2, rtol=2e-2)

    # Second, slightly larger batch to exercise the multi-tile (2-step) grid.
    B2 = 260
    x2 = jax.random.normal(jax.random.PRNGKey(1), (B2, N_FEATURE), jnp.float32)
    out2 = jax.block_until_ready(net_forward(x2, padded))
    ref2 = reference_forward(x2, params)
    assert out2.shape == (B2, N_OUT)
    assert jnp.allclose(jnp.sum(out2, axis=1), 1.0, atol=1e-3)
    assert jnp.allclose(out2, ref2, atol=2e-2, rtol=2e-2)

    print("KERNEL_OK")
</pallas_src>

<mosaic_0001>
module attributes {stable_mosaic.version = 11 : i64} {
  func.func @_mlp_kernel(%arg0: i32, %arg1: memref<16x128xf32, #tpu.memory_space<vmem>>, %arg2: memref<128x512xbf16, #tpu.memory_space<vmem>>, %arg3: memref<1x512xf32, #tpu.memory_space<vmem>>, %arg4: memref<512x512xbf16, #tpu.memory_space<vmem>>, %arg5: memref<1x512xf32, #tpu.memory_space<vmem>>, %arg6: memref<512x384xbf16, #tpu.memory_space<vmem>>, %arg7: memref<1x384xf32, #tpu.memory_space<vmem>>, %arg8: memref<384x384xbf16, #tpu.memory_space<vmem>>, %arg9: memref<1x384xf32, #tpu.memory_space<vmem>>, %arg10: memref<384x128xbf16, #tpu.memory_space<vmem>>, %arg11: memref<1x128xf32, #tpu.memory_space<vmem>>, %arg12: memref<16x128xf32, #tpu.memory_space<vmem>>) attributes {dimension_semantics = [#tpu.dimension_semantics<parallel>], iteration_bounds = array<i64: 1>, scalar_prefetch = 0 : i64, scratch_operands = 0 : i64, tpu.core_type = #tpu.core_type<tc>, window_params = [{transform_indices = @transform_0, window_bounds = array<i64: 16, 128>}, {pipeline_mode = #tpu.pipeline_mode<synchronous>, transform_indices = @transform_1, window_bounds = array<i64: 128, 512>}, {pipeline_mode = #tpu.pipeline_mode<synchronous>, transform_indices = @transform_2, window_bounds = array<i64: 1, 512>}, {pipeline_mode = #tpu.pipeline_mode<synchronous>, transform_indices = @transform_3, window_bounds = array<i64: 512, 512>}, {pipeline_mode = #tpu.pipeline_mode<synchronous>, transform_indices = @transform_4, window_bounds = array<i64: 1, 512>}, {pipeline_mode = #tpu.pipeline_mode<synchronous>, transform_indices = @transform_5, window_bounds = array<i64: 512, 384>}, {pipeline_mode = #tpu.pipeline_mode<synchronous>, transform_indices = @transform_6, window_bounds = array<i64: 1, 384>}, {pipeline_mode = #tpu.pipeline_mode<synchronous>, transform_indices = @transform_7, window_bounds = array<i64: 384, 384>}, {pipeline_mode = #tpu.pipeline_mode<synchronous>, transform_indices = @transform_8, window_bounds = array<i64: 1, 384>}, {pipeline_mode = #tpu.pipeline_mode<synchronous>, transform_indices = @transform_9, window_bounds = array<i64: 384, 128>}, {pipeline_mode = #tpu.pipeline_mode<synchronous>, transform_indices = @transform_10, window_bounds = array<i64: 1, 128>}, {transform_indices = @transform_11, window_bounds = array<i64: 16, 128>}]} {
    %c0 = arith.constant 0 : index
    %c0_0 = arith.constant 0 : index
    %0 = vector.load %arg1[%c0, %c0_0] : memref<16x128xf32, #tpu.memory_space<vmem>>, vector<16x128xf32>
    %1 = arith.truncf %0 : vector<16x128xf32> to vector<16x128xbf16>
    %c0_1 = arith.constant 0 : index
    %c0_2 = arith.constant 0 : index
    %2 = vector.load %arg2[%c0_1, %c0_2] : memref<128x512xbf16, #tpu.memory_space<vmem>>, vector<128x512xbf16>
    %cst = arith.constant dense<0.000000e+00> : vector<16x512xf32>
    %3 = tpu.matmul %1, %2, %cst {dimension_numbers = #tpu.dot_dimension_numbers<[1], [0], [0], [1], [0, 0, 1, 1], [], []>} : vector<16x128xbf16>, vector<128x512xbf16>, vector<16x512xf32> -> vector<16x512xf32>
    %c0_3 = arith.constant 0 : index
    %c0_4 = arith.constant 0 : index
    %4 = vector.load %arg3[%c0_3, %c0_4] : memref<1x512xf32, #tpu.memory_space<vmem>>, vector<1x512xf32>
    %5 = vector.broadcast %4 : vector<1x512xf32> to vector<16x512xf32>
    %6 = arith.addf %3, %5 : vector<16x512xf32>
    %cst_5 = arith.constant 0.000000e+00 : f32
    %7 = vector.broadcast %cst_5 : f32 to vector<16x512xf32>
    %8 = arith.maximumf %6, %7 : vector<16x512xf32>
    %9 = arith.truncf %8 : vector<16x512xf32> to vector<16x512xbf16>
    %c0_6 = arith.constant 0 : index
    %c0_7 = arith.constant 0 : index
    %10 = vector.load %arg4[%c0_6, %c0_7] : memref<512x512xbf16, #tpu.memory_space<vmem>>, vector<512x512xbf16>
    %cst_8 = arith.constant dense<0.000000e+00> : vector<16x512xf32>
    %11 = tpu.matmul %9, %10, %cst_8 {dimension_numbers = #tpu.dot_dimension_numbers<[1], [0], [0], [1], [0, 0, 1, 1], [], []>} : vector<16x512xbf16>, vector<512x512xbf16>, vector<16x512xf32> -> vector<16x512xf32>
    %c0_9 = arith.constant 0 : index
    %c0_10 = arith.constant 0 : index
    %12 = vector.load %arg5[%c0_9, %c0_10] : memref<1x512xf32, #tpu.memory_space<vmem>>, vector<1x512xf32>
    %13 = vector.broadcast %12 : vector<1x512xf32> to vector<16x512xf32>
    %14 = arith.addf %11, %13 : vector<16x512xf32>
    %cst_11 = arith.constant 0.000000e+00 : f32
    %15 = vector.broadcast %cst_11 : f32 to vector<16x512xf32>
    %16 = arith.maximumf %14, %15 : vector<16x512xf32>
    %17 = arith.truncf %16 : vector<16x512xf32> to vector<16x512xbf16>
    %c0_12 = arith.constant 0 : index
    %c0_13 = arith.constant 0 : index
    %18 = vector.load %arg6[%c0_12, %c0_13] : memref<512x384xbf16, #tpu.memory_space<vmem>>, vector<512x384xbf16>
    %cst_14 = arith.constant dense<0.000000e+00> : vector<16x384xf32>
    %19 = tpu.matmul %17, %18, %cst_14 {dimension_numbers = #tpu.dot_dimension_numbers<[1], [0], [0], [1], [0, 0, 1, 1], [], []>} : vector<16x512xbf16>, vector<512x384xbf16>, vector<16x384xf32> -> vector<16x384xf32>
    %c0_15 = arith.constant 0 : index
    %c0_16 = arith.constant 0 : index
    %20 = vector.load %arg7[%c0_15, %c0_16] : memref<1x384xf32, #tpu.memory_space<vmem>>, vector<1x384xf32>
    %21 = vector.broadcast %20 : vector<1x384xf32> to vector<16x384xf32>
    %22 = arith.addf %19, %21 : vector<16x384xf32>
    %cst_17 = arith.constant 0.000000e+00 : f32
    %23 = vector.broadcast %cst_17 : f32 to vector<16x384xf32>
    %24 = arith.maximumf %22, %23 : vector<16x384xf32>
    %25 = arith.truncf %24 : vector<16x384xf32> to vector<16x384xbf16>
    %c0_18 = arith.constant 0 : index
    %c0_19 = arith.constant 0 : index
    %26 = vector.load %arg8[%c0_18, %c0_19] : memref<384x384xbf16, #tpu.memory_space<vmem>>, vector<384x384xbf16>
    %cst_20 = arith.constant dense<0.000000e+00> : vector<16x384xf32>
    %27 = tpu.matmul %25, %26, %cst_20 {dimension_numbers = #tpu.dot_dimension_numbers<[1], [0], [0], [1], [0, 0, 1, 1], [], []>} : vector<16x384xbf16>, vector<384x384xbf16>, vector<16x384xf32> -> vector<16x384xf32>
    %c0_21 = arith.constant 0 : index
    %c0_22 = arith.constant 0 : index
    %28 = vector.load %arg9[%c0_21, %c0_22] : memref<1x384xf32, #tpu.memory_space<vmem>>, vector<1x384xf32>
    %29 = vector.broadcast %28 : vector<1x384xf32> to vector<16x384xf32>
    %30 = arith.addf %27, %29 : vector<16x384xf32>
    %cst_23 = arith.constant 0.000000e+00 : f32
    %31 = vector.broadcast %cst_23 : f32 to vector<16x384xf32>
    %32 = arith.maximumf %30, %31 : vector<16x384xf32>
    %33 = arith.truncf %32 : vector<16x384xf32> to vector<16x384xbf16>
    %c0_24 = arith.constant 0 : index
    %c0_25 = arith.constant 0 : index
    %34 = vector.load %arg10[%c0_24, %c0_25] : memref<384x128xbf16, #tpu.memory_space<vmem>>, vector<384x128xbf16>
    %cst_26 = arith.constant dense<0.000000e+00> : vector<16x128xf32>
    %35 = tpu.matmul %33, %34, %cst_26 {dimension_numbers = #tpu.dot_dimension_numbers<[1], [0], [0], [1], [0, 0, 1, 1], [], []>} : vector<16x384xbf16>, vector<384x128xbf16>, vector<16x128xf32> -> vector<16x128xf32>
    %c0_27 = arith.constant 0 : index
    %c0_28 = arith.constant 0 : index
    %36 = vector.load %arg11[%c0_27, %c0_28] : memref<1x128xf32, #tpu.memory_space<vmem>>, vector<1x128xf32>
    %37 = vector.broadcast %36 : vector<1x128xf32> to vector<16x128xf32>
    %38 = arith.addf %35, %37 : vector<16x128xf32>
    %39 = tpu.iota {dimensions = array<i32: 1>} : vector<16x128xi32>
    %c6_i32 = arith.constant 6 : i32
    %40 = vector.broadcast %c6_i32 : i32 to vector<16x128xi32>
    %41 = arith.cmpi slt, %39, %40 : vector<16x128xi32>
    %cst_29 = arith.constant 0xFF800000 : f32
    %42 = vector.broadcast %cst_29 : f32 to vector<16x128xf32>
    %43 = arith.select %41, %38, %42 : vector<16x128xi1>, vector<16x128xf32>
    %cst_30 = arith.constant dense<0xFF800000> : vector<16xf32>
    %44 = vector.multi_reduction <maximumf>, %43, %cst_30 [1] : vector<16x128xf32> to vector<16xf32>
    %45 = vector.shape_cast %44 : vector<16xf32> to vector<16x1xf32>
    %46 = vector.broadcast %45 : vector<16x1xf32> to vector<16x128xf32>
    %47 = arith.subf %43, %46 : vector<16x128xf32>
    %48 = math.exp %47 : vector<16x128xf32>
    %cst_31 = arith.constant dense<0.000000e+00> : vector<16xf32>
    %49 = vector.multi_reduction <add>, %48, %cst_31 [1] : vector<16x128xf32> to vector<16xf32>
    %50 = vector.shape_cast %49 : vector<16xf32> to vector<16x1xf32>
    %51 = tpu.reciprocal %50 {approx = true} : vector<16x1xf32> -> vector<16x1xf32>
    %52 = arith.mulf %50, %51 : vector<16x1xf32>
    %cst_32 = arith.constant 2.000000e+00 : f32
    %53 = vector.broadcast %cst_32 : f32 to vector<16x1xf32>
    %54 = arith.subf %53, %52 : vector<16x1xf32>
    %55 = arith.mulf %51, %54 : vector<16x1xf32>
    %56 = vector.broadcast %55 : vector<16x1xf32> to vector<16x128xf32>
    %57 = arith.mulf %48, %56 : vector<16x128xf32>
    %c0_33 = arith.constant 0 : index
    %c0_34 = arith.constant 0 : index
    %58 = vector.load %arg12[%c0_33, %c0_34] : memref<16x128xf32, #tpu.memory_space<vmem>>, vector<16x128xf32>
    tpu.vector_store %arg12[%c0_33, %c0_34], %57 {strides = array<i32>} : memref<16x128xf32, #tpu.memory_space<vmem>>, vector<16x128xf32>,
    return
  }
  func.func @transform_0(%arg0: i32) -> (i32, i32) {
    %c0_i32 = arith.constant 0 : i32
    %c0_i32_0 = arith.constant 0 : i32
    return %arg0, %c0_i32 : i32, i32
  }
  func.func @transform_1(%arg0: i32) -> (i32, i32) {
    %c0_i32 = arith.constant 0 : i32
    %c0_i32_0 = arith.constant 0 : i32
    %c0_i32_1 = arith.constant 0 : i32
    return %c0_i32, %c0_i32_0 : i32, i32
  }
  func.func @transform_2(%arg0: i32) -> (i32, i32) {
    %c0_i32 = arith.constant 0 : i32
    %c0_i32_0 = arith.constant 0 : i32
    %c0_i32_1 = arith.constant 0 : i32
    return %c0_i32, %c0_i32_0 : i32, i32
  }
  func.func @transform_3(%arg0: i32) -> (i32, i32) {
    %c0_i32 = arith.constant 0 : i32
    %c0_i32_0 = arith.constant 0 : i32
    %c0_i32_1 = arith.constant 0 : i32
    return %c0_i32, %c0_i32_0 : i32, i32
  }
  func.func @transform_4(%arg0: i32) -> (i32, i32) {
    %c0_i32 = arith.constant 0 : i32
    %c0_i32_0 = arith.constant 0 : i32
    %c0_i32_1 = arith.constant 0 : i32
    return %c0_i32, %c0_i32_0 : i32, i32
  }
  func.func @transform_5(%arg0: i32) -> (i32, i32) {
    %c0_i32 = arith.constant 0 : i32
    %c0_i32_0 = arith.constant 0 : i32
    %c0_i32_1 = arith.constant 0 : i32
    return %c0_i32, %c0_i32_0 : i32, i32
  }
  func.func @transform_6(%arg0: i32) -> (i32, i32) {
    %c0_i32 = arith.constant 0 : i32
    %c0_i32_0 = arith.constant 0 : i32
    %c0_i32_1 = arith.constant 0 : i32
    return %c0_i32, %c0_i32_0 : i32, i32
  }
  func.func @transform_7(%arg0: i32) -> (i32, i32) {
    %c0_i32 = arith.constant 0 : i32
    %c0_i32_0 = arith.constant 0 : i32
    %c0_i32_1 = arith.constant 0 : i32
    return %c0_i32, %c0_i32_0 : i32, i32
  }
  func.func @transform_8(%arg0: i32) -> (i32, i32) {
    %c0_i32 = arith.constant 0 : i32
    %c0_i32_0 = arith.constant 0 : i32
    %c0_i32_1 = arith.constant 0 : i32
    return %c0_i32, %c0_i32_0 : i32, i32
  }
  func.func @transform_9(%arg0: i32) -> (i32, i32) {
    %c0_i32 = arith.constant 0 : i32
    %c0_i32_0 = arith.constant 0 : i32
    %c0_i32_1 = arith.constant 0 : i32
    return %c0_i32, %c0_i32_0 : i32, i32
  }
  func.func @transform_10(%arg0: i32) -> (i32, i32) {
    %c0_i32 = arith.constant 0 : i32
    %c0_i32_0 = arith.constant 0 : i32
    %c0_i32_1 = arith.constant 0 : i32
    return %c0_i32, %c0_i32_0 : i32, i32
  }
  func.func @transform_11(%arg0: i32) -> (i32, i32) {
    %c0_i32 = arith.constant 0 : i32
    %c0_i32_0 = arith.constant 0 : i32
    return %arg0, %c0_i32 : i32, i32
  }
}

</mosaic_0001>

<bundles_post_ra>
// kernel: net_forward.1
= control target key start
LH: loop header
LB: loop body
LE: loop exit
PB: predicated region body
PF: predicated region fallthrough
CT: control target
= control target key end

     0   :  { %16 = vsyncpa [#allocation3], 0  ;;  %s5210_s0 = inlined_call_operand.vmem [shape: f32[16,128], index: 0, kind: input, shape index: {}]   ;;  %s5211_s1 = inlined_call_operand.hbm [shape: bf16[128,512], index: 1, kind: input, shape index: {}]   ;;  %s5212_s2 = inlined_call_operand.vmem [shape: f32[1,512], index: 2, kind: input, shape index: {}]   ;;  %s5213_s3 = inlined_call_operand.hbm [shape: bf16[512,512], index: 3, kind: input, shape index: {}]   ;;  %s5214_s4 = inlined_call_operand.vmem [shape: f32[1,512], index: 4, kind: input, shape index: {}]   ;;  %s5215_s5 = inlined_call_operand.hbm [shape: bf16[512,384], index: 5, kind: input, shape index: {}]   ;;  %s5216_s6 = inlined_call_operand.vmem [shape: f32[1,384], index: 6, kind: input, shape index: {}]   ;;  %s5217_s7 = inlined_call_operand.hbm [shape: bf16[384,384], index: 7, kind: input, shape index: {}]   ;;  %s5218_s8 = inlined_call_operand.vmem [shape: f32[1,384], index: 8, kind: input, shape index: {}]   ;;  %s5219_s9 = inlined_call_operand.hbm [shape: bf16[384,128], index: 9, kind: input, shape index: {}]   ;;  %s5220_s10 = inlined_call_operand.vmem [shape: f32[1,128], index: 10, kind: input, shape index: {}]   ;;  %s5221_s11 = inlined_call_operand.vmem [shape: f32[16,128], index: 11, kind: output, shape index: {}]  }
   0x1   :  { %17 = vsyncpa [#allocation5], 0 }
   0x2   :  { %18 = vsyncpa [#allocation8], 0  ;;  %s40_s19 = sshll.u32 %s5213_s3, 4  ;;  %s5033_s20 = smov [#allocation4]   ;;  %s41_s19 = int_to_ptr.hbm [resolvable:$true] %s40_s19 }
   0x3   :  { %s42_s21 = sshll.u32 %s5033_s20, 4  ;;  %s5034_s22 = smov 256   ;;  %s43_s21 = int_to_ptr.vmem [resolvable:$true] %s42_s21 }
   0x4   :  { %s5035_s23 = smov 16   ;;  %s70_s26 = sshll.u32 %s5217_s7, 4  ;;  %s71_s26 = int_to_ptr.hbm [resolvable:$true] %s70_s26 }
   0x5   :  { %48 = dma.hbm_to_vmem [thread:$0]  %s41_s19, 16384, %s43_s21, [#allocation5], %s5034_s22, %s5034_s22, %s5035_s23  }
   0x6   :  { %s5036_s27 = smov [#allocation7]   ;;  %s25_s12 = sshll.u32 %s5211_s1, 4  ;;  %s26_s12 = int_to_ptr.hbm [resolvable:$true] %s25_s12 }
   0x7   :  { %s72_s28 = sshll.u32 %s5036_s27, 4  ;;  %s5037_s3 = smov 192   ;;  %s73_s28 = int_to_ptr.vmem [resolvable:$true] %s72_s28 }
   0x8   :  { %s5038_s13 = smov 12   ;;  %s55_s16 = sshll.u32 %s5215_s5, 4  ;;  %s56_s16 = int_to_ptr.hbm [resolvable:$true] %s55_s16 }
   0x9   :  { %78 = dma.hbm_to_vmem [thread:$0]  %s71_s26, 9216, %s73_s28, [#allocation8], %s5037_s3, %s5037_s3, %s5038_s13  }
   0xa   :  { %s5039_s17 = smov [#allocation2]   ;;  %s5040_s7 = smov [#allocation6]  }
   0xb   :  { %s27_s18 = sshll.u32 %s5039_s17, 4  ;;  %s57_s19 = sshll.u32 %s5040_s7, 4  ;;  %s28_s18 = int_to_ptr.vmem [resolvable:$true] %s27_s18  ;;  %s58_s19 = int_to_ptr.vmem [resolvable:$true] %s57_s19 }
   0xc   :  { %33 = dma.hbm_to_vmem [thread:$0]  %s26_s12, 4096, %s28_s18, [#allocation3], %s5034_s22, %s5034_s22, %s5035_s23  }
   0xd   :  { %s85_s1 = sshll.u32 %s5219_s9, 4  ;;  %s5041_s24 = smov [#allocation9]   ;;  %s86_s1 = int_to_ptr.hbm [resolvable:$true] %s85_s1 }
   0xe   :  { %63 = dma.hbm_to_vmem [thread:$0]  %s56_s16, 12288, %s58_s19, [#allocation5], %s5037_s3, %s5037_s3, %s5038_s13  }
   0xf   :  { %s87_s25 = sshll.u32 %s5041_s24, 4  ;;  %s5042_s26 = smov 64   ;;  %s88_s25 = int_to_ptr.vmem [resolvable:$true] %s87_s25 }
  0x10   :  { %s5043_s27 = smov 4  }
  0x11   :  { %93 = dma.hbm_to_vmem [thread:$0]  %s86_s1, 3072, %s88_s25, [#allocation8], %s5042_s26, %s5042_s26, %s5043_s27  }
  0x12   :  { %5027 = dma.done.wait [#allocation3], 4096  }
  0x13   :  { %5028 = vsyncadd [#allocation3], 4294963200 }
  0x14   :  { %5029 = dma.done.wait [#allocation5], 28672  }
  0x15   :  { %5030 = vsyncadd [#allocation5], 4294938624 }
  0x16   :  { %5031 = dma.done.wait [#allocation8], 12288  }
  0x17   :  { %5032 = vsyncadd [#allocation8], 4294955008  ;;  %v3241_v0 = vld [vmem:[#allocation2 + $0xe0] sm:$0xf]  ;;  %v4565_v1 = vld [vmem:[#allocation2 + $0xec] sm:$0xf0] }
  0x18   :  { %v4563_v2 = vld [vmem:[#allocation2 + $0xe4] sm:$0xf]  ;;  %v3242_v3 = vor.u32 %v4565_v1, %v3241_v0  ;;  %v3243_v4 = vld [vmem:[#allocation2 + $0xf0] sm:$0xf0]  ;;  %v3249_v5 = vld [vmem:[#allocation2 + $0xe8] sm:$0xf] }
  0x19   :  { %v4566_v6 = vld [vmem:[#allocation2 + $0xf4] sm:$0xf0]  ;;  %v3246_v7 = vor.u32 %v4563_v2, %v3243_v4  ;;  %v4564_v9 = vld [vmem:[#allocation2 + $0xec] sm:$0xf]  ;;  %v3251_v10 = vld [vmem:[#allocation2 + $0xf8] sm:$0xf0] }
  0x1a   :  { %v3250_v8 = vor.u32 %v4566_v6, %v3249_v5  ;;  %v3225_v11 = vld [vmem:[#allocation2 + $0xc0] sm:$0xf]  ;;  %321 = vmatpush.bf16.msra.mxu0 %v3242_v3  ;;  %v3254_v12 = vor.u32 %v4564_v9, %v3251_v10  ;;  %v4561_v13 = vld [vmem:[#allocation2 + $0xcc] sm:$0xf0]  ;;  %v4559_v14 = vld [vmem:[#allocation2 + $0xc4] sm:$0xf] }
  0x1b   :  { %v3227_v15 = vld [vmem:[#allocation2 + $0xd0] sm:$0xf0]  ;;  %335 = vmatpush.bf16.msra.mxu1 %v3246_v7  ;;  %v3226_v16 = vor.u32 %v4561_v13, %v3225_v11  ;;  %v3233_v18 = vld [vmem:[#allocation2 + $0xc8] sm:$0xf]  ;;  %v4562_v19 = vld [vmem:[#allocation2 + $0xd4] sm:$0xf0] }
  0x1c   :  { %349 = vmatpush.bf16.msra.mxu2 %v3250_v8  ;;  %v3230_v17 = vor.u32 %v4559_v14, %v3227_v15  ;;  %v4560_v20 = vld [vmem:[#allocation2 + $0xcc] sm:$0xf]  ;;  %363 = vmatpush.bf16.msra.mxu3 %v3254_v12  ;;  %v3234_v21 = vor.u32 %v4562_v19, %v3233_v18  ;;  %v3235_v22 = vld [vmem:[#allocation2 + $0xd8] sm:$0xf0]  ;;  %v3209_v23 = vld [vmem:[#allocation2 + $0xa0] sm:$0xf] }
  0x1d   :  { %v4557_v24 = vld [vmem:[#allocation2 + $0xac] sm:$0xf0]  ;;  %v3238_v25 = vor.u32 %v4560_v20, %v3235_v22  ;;  %v4555_v26 = vld [vmem:[#allocation2 + $0xa4] sm:$0xf]  ;;  %v3211_v27 = vld [vmem:[#allocation2 + $0xb0] sm:$0xf0] }
  0x1e   :  { %v3217_v28 = vld [vmem:[#allocation2 + $0xa8] sm:$0xf]  ;;  %322 = vmatpush.bf16.msra.mxu0 %v3226_v16  ;;  %v3210_v29 = vor.u32 %v4557_v24, %v3209_v23  ;;  %v4558_v30 = vld [vmem:[#allocation2 + $0xb4] sm:$0xf0]  ;;  %v4556_v31 = vld [vmem:[#allocation2 + $0xac] sm:$0xf]  ;;  %v3214_v33 = vor.u32 %v4555_v26, %v3211_v27 }
  0x1f   :  { %v3219_v32 = vld [vmem:[#allocation2 + $0xb8] sm:$0xf0]  ;;  %336 = vmatpush.bf16.msra.mxu1 %v3230_v17  ;;  %v3218_v34 = vor.u32 %v4558_v30, %v3217_v28  ;;  %v3193_v35 = vld [vmem:[#allocation2 + $0x80] sm:$0xf]  ;;  %v4553_v36 = vld [vmem:[#allocation2 + $0x8c] sm:$0xf0] }
  0x20   :  { %350 = vmatpush.bf16.msra.mxu2 %v3234_v21  ;;  %v4551_v37 = vld [vmem:[#allocation2 + $0x84] sm:$0xf]  ;;  %364 = vmatpush.bf16.msra.mxu3 %v3238_v25  ;;  %v3222_v38 = vor.u32 %v4556_v31, %v3219_v32  ;;  %v3195_v39 = vld [vmem:[#allocation2 + $0x90] sm:$0xf0]  ;;  %v3201_v40 = vld [vmem:[#allocation2 + $0x88] sm:$0xf]  ;;  %v3194_v44 = vor.u32 %v4553_v36, %v3193_v35 }
  0x21   :  { %v4554_v41 = vld [vmem:[#allocation2 + $0x94] sm:$0xf0]  ;;  %v4552_v42 = vld [vmem:[#allocation2 + $0x8c] sm:$0xf]  ;;  %v3203_v43 = vld [vmem:[#allocation2 + $0x98] sm:$0xf0]  ;;  %v3198_v45 = vor.u32 %v4551_v37, %v3195_v39 }
  0x22   :  { %323 = vmatpush.bf16.msra.mxu0 %v3210_v29  ;;  %v3202_v46 = vor.u32 %v4554_v41, %v3201_v40  ;;  %v3177_v47 = vld [vmem:[#allocation2 + $0x60] sm:$0xf]  ;;  %v4549_v48 = vld [vmem:[#allocation2 + $0x6c] sm:$0xf0]  ;;  %v4547_v49 = vld [vmem:[#allocation2 + $0x64] sm:$0xf]  ;;  %v3206_v50 = vor.u32 %v4552_v42, %v3203_v43 }
  0x23   :  { %337 = vmatpush.bf16.msra.mxu1 %v3214_v33  ;;  %v3179_v51 = vld [vmem:[#allocation2 + $0x70] sm:$0xf0]  ;;  %v3185_v52 = vld [vmem:[#allocation2 + $0x68] sm:$0xf]  ;;  %v4550_v53 = vld [vmem:[#allocation2 + $0x74] sm:$0xf0]  ;;  %v3178_v56 = vor.u32 %v4549_v48, %v3177_v47 }
  0x24   :  { %351 = vmatpush.bf16.msra.mxu2 %v3218_v34  ;;  %365 = vmatpush.bf16.msra.mxu3 %v3222_v38  ;;  %v4548_v54 = vld [vmem:[#allocation2 + $0x6c] sm:$0xf]  ;;  %v3187_v55 = vld [vmem:[#allocation2 + $0x78] sm:$0xf0]  ;;  %v3182_v57 = vor.u32 %v4547_v49, %v3179_v51  ;;  %v3186_v58 = vor.u32 %v4550_v53, %v3185_v52  ;;  %v3161_v59 = vld [vmem:[#allocation2 + $0x40] sm:$0xf] }
  0x25   :  { %v4545_v60 = vld [vmem:[#allocation2 + $0x4c] sm:$0xf0]  ;;  %v4543_v61 = vld [vmem:[#allocation2 + $0x44] sm:$0xf]  ;;  %v3190_v62 = vor.u32 %v4548_v54, %v3187_v55  ;;  %v3163_v63 = vld [vmem:[#allocation2 + $0x50] sm:$0xf0] }
  0x26   :  { %324 = vmatpush.bf16.msra.mxu0 %v3194_v44  ;;  %v3169_v0 = vld [vmem:[#allocation2 + $0x48] sm:$0xf]  ;;  %v4546_v1 = vld [vmem:[#allocation2 + $0x54] sm:$0xf0]  ;;  %v4544_v2 = vld [vmem:[#allocation2 + $0x4c] sm:$0xf]  ;;  %v3162_v4 = vor.u32 %v4545_v60, %v3161_v59  ;;  %v3166_v5 = vor.u32 %v4543_v61, %v3163_v63 }
  0x27   :  { %338 = vmatpush.bf16.msra.mxu1 %v3198_v45  ;;  %v3171_v3 = vld [vmem:[#allocation2 + $0x58] sm:$0xf0]  ;;  %v3170_v6 = vor.u32 %v4546_v1, %v3169_v0  ;;  %v3145_v7 = vld [vmem:[#allocation2 + $0x20] sm:$0xf]  ;;  %v4541_v8 = vld [vmem:[#allocation2 + $0x2c] sm:$0xf0] }
  0x28   :  { %352 = vmatpush.bf16.msra.mxu2 %v3202_v46  ;;  %366 = vmatpush.bf16.msra.mxu3 %v3206_v50  ;;  %v4539_v9 = vld [vmem:[#allocation2 + $0x24] sm:$0xf]  ;;  %v3174_v10 = vor.u32 %v4544_v2, %v3171_v3  ;;  %v3147_v11 = vld [vmem:[#allocation2 + $0x30] sm:$0xf0]  ;;  %v3153_v12 = vld [vmem:[#allocation2 + $0x28] sm:$0xf]  ;;  %v3146_v16 = vor.u32 %v4541_v8, %v3145_v7 }
  0x29   :  { %v4542_v13 = vld [vmem:[#allocation2 + $0x34] sm:$0xf0]  ;;  %v4540_v14 = vld [vmem:[#allocation2 + $0x2c] sm:$0xf]  ;;  %v3155_v15 = vld [vmem:[#allocation2 + $0x38] sm:$0xf0]  ;;  %v3150_v19 = vor.u32 %v4539_v9, %v3147_v11 }
  0x2a   :  { %325 = vmatpush.bf16.msra.mxu0 %v3178_v56  ;;  %v3129_v17 = vld [vmem:[#allocation2] sm:$0xf]  ;;  %v4537_v18 = vld [vmem:[#allocation2 + $0xc] sm:$0xf0]  ;;  %v3154_v20 = vor.u32 %v4542_v13, %v3153_v12  ;;  %v4535_v21 = vld [vmem:[#allocation2 + $0x4] sm:$0xf]  ;;  %v3158_v24 = vor.u32 %v4540_v14, %v3155_v15 }
  0x2b   :  { %339 = vmatpush.bf16.msra.mxu1 %v3182_v57  ;;  %v3131_v22 = vld [vmem:[#allocation2 + $0x10] sm:$0xf0]  ;;  %v3137_v23 = vld [vmem:[#allocation2 + $0x8] sm:$0xf]  ;;  %v4538_v25 = vld [vmem:[#allocation2 + $0x14] sm:$0xf0]  ;;  %v3130_v31 = vor.u32 %v4537_v18, %v3129_v17 }
  0x2c   :  { %353 = vmatpush.bf16.msra.mxu2 %v3186_v58  ;;  %367 = vmatpush.bf16.msra.mxu3 %v3190_v62  ;;  %v4536_v26 = vld [vmem:[#allocation2 + $0xc] sm:$0xf]  ;;  %v3139_v27 = vld [vmem:[#allocation2 + $0x18] sm:$0xf0]  ;;  %v116_v28 = vld [vmem:[%s5210_s0] sm:$0xff]  ;;  %v3134_v35 = vor.u32 %v4535_v21, %v3131_v22  ;;  %v3138_v36 = vor.u32 %v4538_v25, %v3137_v23 }
  0x2d   :  { %v3369_v29 = vld [vmem:[#allocation4 + $0xe0] sm:$0xf]  ;;  %v4597_v30 = vld [vmem:[#allocation4 + $0xec] sm:$0xf0]  ;;  %v117_v32 = vld [vmem:[%s5210_s0 + $0x8] sm:$0xff]  ;;  %v3142_v37 = vor.u32 %v4536_v26, %v3139_v27 }
  0x2e   :  { %326 = vmatpush.bf16.msra.mxu0 %v3162_v4  ;;  %v3497_v33 = vld [vmem:[#allocation4 + $0x1e0] sm:$0xf]  ;;  %v4629_v34 = vld [vmem:[#allocation4 + $0x1ec] sm:$0xf0]  ;;  %v3370_v38 = vor.u32 %v4597_v30, %v3369_v29  ;;  %v118_v42 = vpack.c.bf16 %v117_v32, %v116_v28 }
  0x2f   :  { %340 = vmatpush.bf16.msra.mxu1 %v3166_v5  ;;  %v3353_v39 = vld [vmem:[#allocation4 + $0xc0] sm:$0xf]  ;;  %v4661_v41 = vld [vmem:[#allocation4 + $0x2ec] sm:$0xf0]  ;;  %v3498_v43 = vor.u32 %v4629_v34, %v3497_v33 }
  0x30   :  { %354 = vmatpush.bf16.msra.mxu2 %v3170_v6  ;;  %368 = vmatpush.bf16.msra.mxu3 %v3174_v10  ;;  %v3625_v40 = vld [vmem:[#allocation4 + $0x2e0] sm:$0xf]  ;;  %v4593_v44 = vld [vmem:[#allocation4 + $0xcc] sm:$0xf0] }
  0x31   :  { %v3753_v45 = vld [vmem:[#allocation4 + $0x3e0] sm:$0xf]  ;;  %v4693_v46 = vld [vmem:[#allocation4 + $0x3ec] sm:$0xf0]  ;;  %v3626_v49 = vor.u32 %v4661_v41, %v3625_v40  ;;  %v3354_v50 = vor.u32 %v4593_v44, %v3353_v39 }
  0x32   :  { %327 = vmatpush.bf16.msra.mxu0 %v3146_v16  ;;  %v3481_v47 = vld [vmem:[#allocation4 + $0x1c0] sm:$0xf]  ;;  %v4625_v48 = vld [vmem:[#allocation4 + $0x1cc] sm:$0xf0]  ;;  %v3754_v51 = vor.u32 %v4693_v46, %v3753_v45 }
  0x33   :  { %341 = vmatpush.bf16.msra.mxu1 %v3150_v19  ;;  %v3337_v52 = vld [vmem:[#allocation4 + $0xa0] sm:$0xf]  ;;  %v4657_v54 = vld [vmem:[#allocation4 + $0x2cc] sm:$0xf0]  ;;  %v3482_v55 = vor.u32 %v4625_v48, %v3481_v47 }
  0x34   :  { %355 = vmatpush.bf16.msra.mxu2 %v3154_v20  ;;  %369 = vmatpush.bf16.msra.mxu3 %v3158_v24  ;;  %v3609_v53 = vld [vmem:[#allocation4 + $0x2c0] sm:$0xf]  ;;  %v4589_v56 = vld [vmem:[#allocation4 + $0xac] sm:$0xf0] }
  0x35   :  { %v3737_v57 = vld [vmem:[#allocation4 + $0x3c0] sm:$0xf]  ;;  %v4689_v58 = vld [vmem:[#allocation4 + $0x3cc] sm:$0xf0]  ;;  %v3610_v61 = vor.u32 %v4657_v54, %v3609_v53  ;;  %v3338_v62 = vor.u32 %v4589_v56, %v3337_v52 }
  0x36   :  { %328 = vmatpush.bf16.msra.mxu0 %v3130_v31  ;;  %v3465_v59 = vld [vmem:[#allocation4 + $0x1a0] sm:$0xf]  ;;  %v4621_v60 = vld [vmem:[#allocation4 + $0x1ac] sm:$0xf0]  ;;  %v3738_v63 = vor.u32 %v4689_v58, %v3737_v57  ;;  %v4595_v57 = vld [vmem:[#allocation4 + $0xe4] sm:$0xf] }
  0x37   :  { %342 = vmatpush.bf16.msra.mxu1 %v3134_v35  ;;  %v3321_v0 = vld [vmem:[#allocation4 + $0x80] sm:$0xf]  ;;  %v4653_v2 = vld [vmem:[#allocation4 + $0x2ac] sm:$0xf0]  ;;  %v3466_v3 = vor.u32 %v4621_v60, %v3465_v59  ;;  %v3371_v58 = vld [vmem:[#allocation4 + $0xf0] sm:$0xf0] }
  0x38   :  { %356 = vmatpush.bf16.msra.mxu2 %v3138_v36  ;;  %370 = vmatpush.bf16.msra.mxu3 %v3142_v37  ;;  %v3593_v1 = vld [vmem:[#allocation4 + $0x2a0] sm:$0xf]  ;;  %v4585_v4 = vld [vmem:[#allocation4 + $0x8c] sm:$0xf0]  ;;  %v4627_v59 = vld [vmem:[#allocation4 + $0x1e4] sm:$0xf] }
  0x39   :  { %329 = vmatmul.bf16.vlgmr.msra.gmra.mxu0 %v118_v42  ;;  %v3721_v5 = vld [vmem:[#allocation4 + $0x3a0] sm:$0xf]  ;;  %v4685_v6 = vld [vmem:[#allocation4 + $0x3ac] sm:$0xf0]  ;;  %v3594_v9 = vor.u32 %v4653_v2, %v3593_v1  ;;  %v3322_v10 = vor.u32 %v4585_v4, %v3321_v0  ;;  %v3499_v60 = vld [vmem:[#allocation4 + $0x1f0] sm:$0xf0] }
  0x3a   :  { %1167 = vmatpush.bf16.msrb.mxu0 %v3370_v38  ;;  %343 = vmatmul.bf16.vlgmr.msra.gmra.mxu1 %v118_v42  ;;  %v3449_v7 = vld [vmem:[#allocation4 + $0x180] sm:$0xf]  ;;  %v4617_v8 = vld [vmem:[#allocation4 + $0x18c] sm:$0xf0]  ;;  %v3722_v11 = vor.u32 %v4685_v6, %v3721_v5  ;;  %v4591_v0 = vld [vmem:[#allocation4 + $0xc4] sm:$0xf]  ;;  %v3374_v5 = vor.u32 %v4595_v57, %v3371_v58 }
  0x3b   :  { %1181 = vmatpush.bf16.msrb.mxu1 %v3498_v43  ;;  %357 = vmatmul.bf16.vlgmr.msra.gmra.mxu2 %v118_v42  ;;  %v3305_v12 = vld [vmem:[#allocation4 + $0x60] sm:$0xf]  ;;  %v4649_v14 = vld [vmem:[#allocation4 + $0x28c] sm:$0xf0]  ;;  %v3450_v15 = vor.u32 %v4617_v8, %v3449_v7  ;;  %v4659_v7 = vld [vmem:[#allocation4 + $0x2e4] sm:$0xf] }
  0x3c   :  { %371 = vmatmul.bf16.vlgmr.msra.gmra.mxu3 %v118_v42  ;;  %1195 = vmatpush.bf16.msrb.mxu2 %v3626_v49  ;;  %v3577_v13 = vld [vmem:[#allocation4 + $0x280] sm:$0xf]  ;;  %v4581_v16 = vld [vmem:[#allocation4 + $0x6c] sm:$0xf0]  ;;  %v3627_v8 = vld [vmem:[#allocation4 + $0x2f0] sm:$0xf0] }
  0x3d   :  { %1209 = vmatpush.bf16.msrb.mxu3 %v3754_v51  ;;  %v3705_v17 = vld [vmem:[#allocation4 + $0x380] sm:$0xf]  ;;  %v4681_v18 = vld [vmem:[#allocation4 + $0x38c] sm:$0xf0]  ;;  %v3578_v21 = vor.u32 %v4649_v14, %v3577_v13  ;;  %v3306_v22 = vor.u32 %v4581_v16, %v3305_v12  ;;  %v3755_v12 = vld [vmem:[#allocation4 + $0x3f0] sm:$0xf0] }
  0x3e   :  { %1168 = vmatpush.bf16.msrb.mxu0 %v3354_v50  ;;  %v3433_v19 = vld [vmem:[#allocation4 + $0x160] sm:$0xf]  ;;  %v4613_v20 = vld [vmem:[#allocation4 + $0x16c] sm:$0xf0]  ;;  %v3706_v23 = vor.u32 %v4681_v18, %v3705_v17  ;;  %v4623_v13 = vld [vmem:[#allocation4 + $0x1c4] sm:$0xf]  ;;  %v3630_v17 = vor.u32 %v4659_v7, %v3627_v8 }
  0x3f   :  { %1182 = vmatpush.bf16.msrb.mxu1 %v3482_v55  ;;  %v3289_v24 = vld [vmem:[#allocation4 + $0x40] sm:$0xf]  ;;  %v4645_v26 = vld [vmem:[#allocation4 + $0x26c] sm:$0xf0]  ;;  %v3434_v27 = vor.u32 %v4613_v20, %v3433_v19  ;;  %v3483_v14 = vld [vmem:[#allocation4 + $0x1d0] sm:$0xf0] }
  0x40   :  { %1196 = vmatpush.bf16.msrb.mxu2 %v3610_v61  ;;  %v3561_v25 = vld [vmem:[#allocation4 + $0x260] sm:$0xf]  ;;  %v4577_v28 = vld [vmem:[#allocation4 + $0x4c] sm:$0xf0]  ;;  %v4587_v20 = vld [vmem:[#allocation4 + $0xa4] sm:$0xf] }
  0x41   :  { %1210 = vmatpush.bf16.msrb.mxu3 %v3738_v63  ;;  %v3689_v29 = vld [vmem:[#allocation4 + $0x360] sm:$0xf]  ;;  %v4677_v30 = vld [vmem:[#allocation4 + $0x36c] sm:$0xf0]  ;;  %v3562_v33 = vor.u32 %v4645_v26, %v3561_v25  ;;  %v3290_v34 = vor.u32 %v4577_v28, %v3289_v24  ;;  %v3339_v24 = vld [vmem:[#allocation4 + $0xb0] sm:$0xf0] }
  0x42   :  { %1169 = vmatpush.bf16.msrb.mxu0 %v3338_v62  ;;  %v3417_v31 = vld [vmem:[#allocation4 + $0x140] sm:$0xf]  ;;  %v4609_v32 = vld [vmem:[#allocation4 + $0x14c] sm:$0xf0]  ;;  %v3690_v35 = vor.u32 %v4677_v30, %v3689_v29  ;;  %v4687_v25 = vld [vmem:[#allocation4 + $0x3c4] sm:$0xf]  ;;  %v3342_v30 = vor.u32 %v4587_v20, %v3339_v24 }
  0x43   :  { %1183 = vmatpush.bf16.msrb.mxu1 %v3466_v3  ;;  %v3273_v36 = vld [vmem:[#allocation4 + $0x20] sm:$0xf]  ;;  %v4641_v38 = vld [vmem:[#allocation4 + $0x24c] sm:$0xf0]  ;;  %v3418_v39 = vor.u32 %v4609_v32, %v3417_v31  ;;  %v3739_v26 = vld [vmem:[#allocation4 + $0x3d0] sm:$0xf0] }
  0x44   :  { %1197 = vmatpush.bf16.msrb.mxu2 %v3594_v9  ;;  %v3545_v37 = vld [vmem:[#allocation4 + $0x240] sm:$0xf]  ;;  %v4573_v40 = vld [vmem:[#allocation4 + $0x2c] sm:$0xf0]  ;;  %v3502_v9 = vor.u32 %v4627_v59, %v3499_v60  ;;  %v3467_v28 = vld [vmem:[#allocation4 + $0x1b0] sm:$0xf0]  ;;  %v3742_v31 = vor.u32 %v4687_v25, %v3739_v26 }
  0x45   :  { %1211 = vmatpush.bf16.msrb.mxu3 %v3722_v11  ;;  %v3673_v41 = vld [vmem:[#allocation4 + $0x340] sm:$0xf]  ;;  %v4673_v42 = vld [vmem:[#allocation4 + $0x34c] sm:$0xf0]  ;;  %v3546_v45 = vor.u32 %v4641_v38, %v3545_v37  ;;  %v3274_v47 = vor.u32 %v4573_v40, %v3273_v36  ;;  %v4691_v11 = vld [vmem:[#allocation4 + $0x3e4] sm:$0xf] }
  0x46   :  { %1170 = vmatpush.bf16.msrb.mxu0 %v3322_v10  ;;  %v3401_v43 = vld [vmem:[#allocation4 + $0x120] sm:$0xf]  ;;  %v4605_v44 = vld [vmem:[#allocation4 + $0x12c] sm:$0xf0]  ;;  %v3674_v48 = vor.u32 %v4673_v42, %v3673_v41  ;;  %v3355_v10 = vld [vmem:[#allocation4 + $0xd0] sm:$0xf0]  ;;  %v3758_v19 = vor.u32 %v4691_v11, %v3755_v12 }
  0x47   :  { %1184 = vmatpush.bf16.msrb.mxu1 %v3450_v15  ;;  %v3257_v46 = vld [vmem:[#allocation4] sm:$0xf]  ;;  %v4569_v49 = vld [vmem:[#allocation4 + $0xc] sm:$0xf0]  ;;  %v3402_v52 = vor.u32 %v4605_v44, %v3401_v43  ;;  %v3358_v18 = vor.u32 %v4591_v0, %v3355_v10  ;;  %v3451_v36 = vld [vmem:[#allocation4 + $0x190] sm:$0xf0] }
  0x48   :  { %1198 = vmatpush.bf16.msrb.mxu2 %v3578_v21  ;;  %v3529_v50 = vld [vmem:[#allocation4 + $0x220] sm:$0xf]  ;;  %v4637_v51 = vld [vmem:[#allocation4 + $0x22c] sm:$0xf0]  ;;  %v3258_v62 = vor.u32 %v4569_v49, %v3257_v46  ;;  %v4655_v21 = vld [vmem:[#allocation4 + $0x2c4] sm:$0xf] }
  0x49   :  { %1212 = vmatpush.bf16.msrb.mxu3 %v3706_v23  ;;  %v3385_v53 = vld [vmem:[#allocation4 + $0x100] sm:$0xf]  ;;  %v4669_v55 = vld [vmem:[#allocation4 + $0x32c] sm:$0xf0]  ;;  %v3530_v61 = vor.u32 %v4637_v51, %v3529_v50  ;;  %v3486_v23 = vor.u32 %v4623_v13, %v3483_v14  ;;  %v3595_v40 = vld [vmem:[#allocation4 + $0x2b0] sm:$0xf0] }
  0x4a   :  { %1171 = vmatpush.bf16.msrb.mxu0 %v3306_v22  ;;  %v3657_v54 = vld [vmem:[#allocation4 + $0x320] sm:$0xf]  ;;  %v4601_v56 = vld [vmem:[#allocation4 + $0x10c] sm:$0xf0]  ;;  %v3611_v22 = vld [vmem:[#allocation4 + $0x2d0] sm:$0xf0] }
  0x4b   :  { %1185 = vmatpush.bf16.msrb.mxu1 %v3434_v27  ;;  %v3658_v63 = vor.u32 %v4669_v55, %v3657_v54  ;;  %v3513_v1 = vld [vmem:[#allocation4 + $0x200] sm:$0xf]  ;;  %v4633_v2 = vld [vmem:[#allocation4 + $0x20c] sm:$0xf0]  ;;  %v3386_v4 = vor.u32 %v4601_v56, %v3385_v53  ;;  %v4619_v27 = vld [vmem:[#allocation4 + $0x1a4] sm:$0xf]  ;;  %v3614_v29 = vor.u32 %v4655_v21, %v3611_v22 }
  0x4c   :  { %1199 = vmatpush.bf16.msrb.mxu2 %v3562_v33  ;;  %v3641_v3 = vld [vmem:[#allocation4 + $0x300] sm:$0xf]  ;;  %v4665_v6 = vld [vmem:[#allocation4 + $0x30c] sm:$0xf0]  ;;  %v3514_v15 = vor.u32 %v4633_v2, %v3513_v1  ;;  %v3470_v32 = vor.u32 %v4619_v27, %v3467_v28  ;;  %v4583_v33 = vld [vmem:[#allocation4 + $0x84] sm:$0xf] }
  0x4d   :  { %1213 = vmatpush.bf16.msrb.mxu3 %v3690_v35  ;;  %v3642_v16 = vor.u32 %v4665_v6, %v3641_v3  ;;  %v4615_v35 = vld [vmem:[#allocation4 + $0x184] sm:$0xf]  ;;  %v3723_v43 = vld [vmem:[#allocation4 + $0x3b0] sm:$0xf0] }
  0x4e   :  { %1172 = vmatpush.bf16.msrb.mxu0 %v3290_v34  ;;  %v3323_v34 = vld [vmem:[#allocation4 + $0x90] sm:$0xf0]  ;;  %v3454_v38 = vor.u32 %v4615_v35, %v3451_v36  ;;  %v4683_v41 = vld [vmem:[#allocation4 + $0x3a4] sm:$0xf]  ;;  %v151_v35 = vld [vmem:[%s5212_s2] sm:$0xf] }
  0x4f   :  { %1186 = vmatpush.bf16.msrb.mxu1 %v3418_v39  ;;  %v3326_v37 = vor.u32 %v4583_v33, %v3323_v34  ;;  %v4651_v39 = vld [vmem:[#allocation4 + $0x2a4] sm:$0xf]  ;;  %v3726_v44 = vor.u32 %v4683_v41, %v3723_v43  ;;  %v3307_v46 = vld [vmem:[#allocation4 + $0x70] sm:$0xf0] }
  0x50   :  { %1200 = vmatpush.bf16.msrb.mxu2 %v3546_v45  ;;  %v3598_v42 = vor.u32 %v4651_v39, %v3595_v40  ;;  %v4579_v45 = vld [vmem:[#allocation4 + $0x64] sm:$0xf]  ;;  %v3435_v49 = vld [vmem:[#allocation4 + $0x170] sm:$0xf0]  ;;  %v154_v39 = vperm.slane %v151_v35, 1 }
  0x51   :  { %1214 = vmatpush.bf16.msrb.mxu3 %v3674_v48  ;;  %v3310_v48 = vor.u32 %v4579_v45, %v3307_v46  ;;  %v4647_v51 = vld [vmem:[#allocation4 + $0x284] sm:$0xf]  ;;  %v3707_v55 = vld [vmem:[#allocation4 + $0x390] sm:$0xf0] }
  0x52   :  { %1173 = vmatpush.bf16.msrb.mxu0 %v3274_v47  ;;  %v4611_v47 = vld [vmem:[#allocation4 + $0x164] sm:$0xf]  ;;  %v3291_v58 = vld [vmem:[#allocation4 + $0x50] sm:$0xf0] }
  0x53   :  { %1187 = vmatpush.bf16.msrb.mxu1 %v3402_v52  ;;  %v3438_v50 = vor.u32 %v4611_v47, %v3435_v49  ;;  %v3579_v52 = vld [vmem:[#allocation4 + $0x290] sm:$0xf0]  ;;  %v4679_v54 = vld [vmem:[#allocation4 + $0x384] sm:$0xf]  ;;  %v4598_v49 = vld [vmem:[#allocation4 + $0xf4] sm:$0xf0] }
  0x54   :  { %1201 = vmatpush.bf16.msrb.mxu2 %v3530_v61  ;;  %v3582_v53 = vor.u32 %v4647_v51, %v3579_v52  ;;  %v3710_v56 = vor.u32 %v4679_v54, %v3707_v55  ;;  %v4575_v57 = vld [vmem:[#allocation4 + $0x44] sm:$0xf]  ;;  %v3419_v61 = vld [vmem:[#allocation4 + $0x150] sm:$0xf0]  ;;  %v155_v51 = vperm.slane %v151_v35, 2  ;;  %v156_v55 = vperm.slane %v151_v35, 3 }
  0x55   :  { %1215 = vmatpush.bf16.msrb.mxu3 %v3658_v63  ;;  %v4607_v59 = vld [vmem:[#allocation4 + $0x144] sm:$0xf]  ;;  %v3294_v60 = vor.u32 %v4575_v57, %v3291_v58  ;;  %v3563_v0 = vld [vmem:[#allocation4 + $0x270] sm:$0xf0]  ;;  %v4630_v54 = vld [vmem:[#allocation4 + $0x1f4] sm:$0xf0] }
  0x56   :  { %1174 = vmatpush.bf16.msrb.mxu0 %v3258_v62  ;;  %v3422_v62 = vor.u32 %v4607_v59, %v3419_v61  ;;  %v4643_v63 = vld [vmem:[#allocation4 + $0x264] sm:$0xf]  ;;  %v3691_v3 = vld [vmem:[#allocation4 + $0x370] sm:$0xf0]  ;;  %v3361_v61 = vld [vmem:[#allocation4 + $0xc8] sm:$0xf] }
  0x57   :  { %1188 = vmatpush.bf16.msrb.mxu1 %v3386_v4  ;;  %v4675_v1 = vld [vmem:[#allocation4 + $0x364] sm:$0xf]  ;;  %v3566_v2 = vor.u32 %v4643_v63, %v3563_v0  ;;  %v3275_v6 = vld [vmem:[#allocation4 + $0x30] sm:$0xf0] }
  0x58   :  { %1202 = vmatpush.bf16.msrb.mxu2 %v3514_v15  ;;  %v3694_v4 = vor.u32 %v4675_v1, %v3691_v3  ;;  %v4603_v8 = vld [vmem:[#allocation4 + $0x124] sm:$0xf]  ;;  %v3547_v12 = vld [vmem:[#allocation4 + $0x250] sm:$0xf0]  ;;  %v3489_v1 = vld [vmem:[#allocation4 + $0x1c8] sm:$0xf] }
  0x59   :  { %1216 = vmatpush.bf16.msrb.mxu3 %v3642_v16  ;;  %v4639_v11 = vld [vmem:[#allocation4 + $0x244] sm:$0xf]  ;;  %v3675_v15 = vld [vmem:[#allocation4 + $0x350] sm:$0xf0] }
  0x5a   :  { %1223 = vmatpush.bf16.msra.mxu0 %v3374_v5  ;;  %v4571_v5 = vld [vmem:[#allocation4 + $0x24] sm:$0xf]  ;;  %v3550_v14 = vor.u32 %v4639_v11, %v3547_v12  ;;  %v3387_v21 = vld [vmem:[#allocation4 + $0x110] sm:$0xf0] }
  0x5b   :  { %1237 = vmatpush.bf16.msra.mxu1 %v3502_v9  ;;  %v3278_v7 = vor.u32 %v4571_v5, %v3275_v6  ;;  %v3403_v9 = vld [vmem:[#allocation4 + $0x130] sm:$0xf0]  ;;  %v4671_v13 = vld [vmem:[#allocation4 + $0x344] sm:$0xf] }
  0x5c   :  { %1251 = vmatpush.bf16.msra.mxu2 %v3630_v17  ;;  %v3406_v10 = vor.u32 %v4603_v8, %v3403_v9  ;;  %v3678_v16 = vor.u32 %v4671_v13, %v3675_v15  ;;  %v4567_v17 = vld [vmem:[#allocation4 + $0x4] sm:$0xf]  ;;  %v3531_v24 = vld [vmem:[#allocation4 + $0x230] sm:$0xf0]  ;;  %v3633_v8 = vld [vmem:[#allocation4 + $0x2e8] sm:$0xf] }
  0x5d   :  { %1265 = vmatpush.bf16.msra.mxu3 %v3758_v19  ;;  %v4599_v19 = vld [vmem:[#allocation4 + $0x104] sm:$0xf]  ;;  %v3659_v26 = vld [vmem:[#allocation4 + $0x330] sm:$0xf0]  ;;  %v4662_v9 = vld [vmem:[#allocation4 + $0x2f4] sm:$0xf0] }
  0x5e   :  { %1224 = vmatpush.bf16.msra.mxu0 %v3358_v18  ;;  %v3259_v18 = vld [vmem:[#allocation4 + $0x10] sm:$0xf0]  ;;  %v3390_v22 = vor.u32 %v4599_v19, %v3387_v21  ;;  %v4667_v25 = vld [vmem:[#allocation4 + $0x324] sm:$0xf]  ;;  %v4694_v13 = vld [vmem:[#allocation4 + $0x3f4] sm:$0xf0] }
  0x5f   :  { %1238 = vmatpush.bf16.msra.mxu1 %v3486_v23  ;;  %v3262_v20 = vor.u32 %v4567_v17, %v3259_v18  ;;  %v4635_v23 = vld [vmem:[#allocation4 + $0x224] sm:$0xf]  ;;  %v3662_v28 = vor.u32 %v4667_v25, %v3659_v26  ;;  %v3643_v33 = vld [vmem:[#allocation4 + $0x310] sm:$0xf0]  ;;  %v4590_v15 = vld [vmem:[#allocation4 + $0xb4] sm:$0xf0] }
  0x60   :  { %1252 = vmatpush.bf16.msra.mxu2 %v3614_v29  ;;  %v3534_v27 = vor.u32 %v4635_v23, %v3531_v24  ;;  %v4631_v29 = vld [vmem:[#allocation4 + $0x204] sm:$0xf]  ;;  %v3473_v18 = vld [vmem:[#allocation4 + $0x1a8] sm:$0xf]  ;;  %v4622_v19 = vld [vmem:[#allocation4 + $0x1b4] sm:$0xf0] }
  0x61   :  { %1266 = vmatpush.bf16.msra.mxu3 %v3742_v31  ;;  %v3617_v26 = vld [vmem:[#allocation4 + $0x2c8] sm:$0xf] }
  0x62   :  { %1225 = vmatpush.bf16.msra.mxu0 %v3342_v30  ;;  %v3515_v30 = vld [vmem:[#allocation4 + $0x210] sm:$0xf0] }
  0x63   :  { %1239 = vmatpush.bf16.msra.mxu1 %v3470_v32  ;;  %v3518_v31 = vor.u32 %v4631_v29, %v3515_v30  ;;  %v4663_v32 = vld [vmem:[#allocation4 + $0x304] sm:$0xf]  ;;  %v3474_v30 = vor.u32 %v4622_v19, %v3473_v18  ;;  %v3265_v18 = vld [vmem:[#allocation4 + $0x8] sm:$0xf]  ;;  %v4570_v19 = vld [vmem:[#allocation4 + $0x14] sm:$0xf0] }
  0x64   :  { %1253 = vmatpush.bf16.msra.mxu2 %v3598_v42  ;;  %v3646_v34 = vor.u32 %v4663_v32, %v3643_v33  ;;  %v3329_v32 = vld [vmem:[#allocation4 + $0x88] sm:$0xf]  ;;  %v4586_v33 = vld [vmem:[#allocation4 + $0x94] sm:$0xf0] }
  0x65   :  { %1267 = vmatpush.bf16.msra.mxu3 %v3726_v44 }
  0x66   :  { %1226 = vmatpush.bf16.msra.mxu0 %v3326_v37  ;;  %v153_v37 = vperm.slane %v151_v35, 0  ;;  %v4618_v35 = vld [vmem:[#allocation4 + $0x194] sm:$0xf0] }
  0x67   :  { %1240 = vmatpush.bf16.msra.mxu1 %v3454_v38 }
  0x68   :  { %1254 = vmatpush.bf16.msra.mxu2 %v3582_v53  ;;  %v3505_v53 = vld [vmem:[#allocation4 + $0x1e8] sm:$0xf] }
  0x69   :  { %1268 = vmatpush.bf16.msra.mxu3 %v3710_v56 }
  0x6a   :  { %1227 = vmatpush.bf16.msra.mxu0 %v3310_v48  ;;  %v3377_v48 = vld [vmem:[#allocation4 + $0xe8] sm:$0xf] }
  0x6b   :  { %1241 = vmatpush.bf16.msra.mxu1 %v3438_v50  ;;  %v3378_v58 = vor.u32 %v4598_v49, %v3377_v48 }
  0x6c   :  { %1255 = vmatpush.bf16.msra.mxu2 %v3566_v2  ;;  %v4626_v2 = vld [vmem:[#allocation4 + $0x1d4] sm:$0xf0] }
  0x6d   :  { %1269 = vmatpush.bf16.msra.mxu3 %v3694_v4  ;;  %v3490_v12 = vor.u32 %v4626_v2, %v3489_v1  ;;  %v4646_v1 = vld [vmem:[#allocation4 + $0x274] sm:$0xf0] }
  0x6e   :  { %1228 = vmatpush.bf16.msra.mxu0 %v3294_v60  ;;  %v3506_v60 = vor.u32 %v4630_v54, %v3505_v53  ;;  %v3713_v54 = vld [vmem:[#allocation4 + $0x388] sm:$0xf] }
  0x6f   :  { %1242 = vmatpush.bf16.msra.mxu1 %v3422_v62  ;;  %v4594_v62 = vld [vmem:[#allocation4 + $0xd4] sm:$0xf0] }
  0x70   :  { %1256 = vmatpush.bf16.msra.mxu2 %v3550_v14  ;;  %v3345_v14 = vld [vmem:[#allocation4 + $0xa8] sm:$0xf] }
  0x71   :  { %1270 = vmatpush.bf16.msra.mxu3 %v3678_v16  ;;  %v3346_v25 = vor.u32 %v4590_v15, %v3345_v14  ;;  %v3681_v14 = vld [vmem:[#allocation4 + $0x348] sm:$0xf] }
  0x72   :  { %1229 = vmatpush.bf16.msra.mxu0 %v3278_v7  ;;  %v3362_v7 = vor.u32 %v4594_v62, %v3361_v61 }
  0x73   :  { %1243 = vmatpush.bf16.msra.mxu1 %v3406_v10  ;;  %v3761_v10 = vld [vmem:[#allocation4 + $0x3e8] sm:$0xf] }
  0x74   :  { %1257 = vmatpush.bf16.msra.mxu2 %v3534_v27  ;;  %v3762_v24 = vor.u32 %v4694_v13, %v3761_v10  ;;  %v4658_v27 = vld [vmem:[#allocation4 + $0x2d4] sm:$0xf0] }
  0x75   :  { %1271 = vmatpush.bf16.msra.mxu3 %v3662_v28  ;;  %v3745_v28 = vld [vmem:[#allocation4 + $0x3c8] sm:$0xf]  ;;  %v4642_v13 = vld [vmem:[#allocation4 + $0x254] sm:$0xf0] }
  0x76   :  { %1230 = vmatpush.bf16.msra.mxu0 %v3262_v20 }
  0x77   :  { %1244 = vmatpush.bf16.msra.mxu1 %v3390_v22  ;;  %v3634_v22 = vor.u32 %v4662_v9, %v3633_v8  ;;  %v3409_v8 = vld [vmem:[#allocation4 + $0x128] sm:$0xf]  ;;  %v4606_v9 = vld [vmem:[#allocation4 + $0x134] sm:$0xf0] }
  0x78   :  { %1258 = vmatpush.bf16.msra.mxu2 %v3518_v31  ;;  %v4690_v31 = vld [vmem:[#allocation4 + $0x3d4] sm:$0xf0] }
  0x79   :  { %1272 = vmatpush.bf16.msra.mxu3 %v3646_v34  ;;  %v3457_v34 = vld [vmem:[#allocation4 + $0x188] sm:$0xf] }
  0xb6   :  { %v330_v36 = vpop.f32.mrf.mxu0 }
  0xb7   :  { %v344_v38 = vpop.f32.mrf.mxu1  ;;  %v331_v40 = vadd.f32 %v330_v36, %v153_v37  ;;  %v3618_v36 = vor.u32 %v4658_v27, %v3617_v26  ;;  %v4628_v26 = vld [vmem:[#allocation4 + $0x1ec] sm:$0xf]  ;;  %v3507_v27 = vld [vmem:[#allocation4 + $0x1f8] sm:$0xf0] }
  0xb8   :  { %v345_v41 = vadd.f32 %v344_v38, %v154_v39  ;;  %v3330_v38 = vor.u32 %v4586_v33, %v3329_v32  ;;  %v3266_v32 = vor.u32 %v4570_v19, %v3265_v18  ;;  %v4580_v18 = vld [vmem:[#allocation4 + $0x6c] sm:$0xf]  ;;  %v3315_v19 = vld [vmem:[#allocation4 + $0x78] sm:$0xf0] }
  0xb9   :  { %v377_v45 = vmax.f32 %v331_v40, 0.0  ;;  %v4654_v40 = vld [vmem:[#allocation4 + $0x2b4] sm:$0xf0] }
  0xba   :  { %v378_v50 = vmax.f32 %v345_v41, 0.0  ;;  %v3458_v41 = vor.u32 %v4618_v35, %v3457_v34  ;;  %v3665_v34 = vld [vmem:[#allocation4 + $0x328] sm:$0xf]  ;;  %v4670_v35 = vld [vmem:[#allocation4 + $0x334] sm:$0xf0] }
  0xbe   :  { %v358_v42 = vpop.f32.mrf.mxu2  ;;  %v332_v44 = vpop.f32.mrf.mxu0 }
  0xbf   :  { %v372_v43 = vpop.f32.mrf.mxu3  ;;  %v333_v46 = vadd.f32 %v332_v44, %v153_v37  ;;  %v346_v47 = vpop.f32.mrf.mxu1  ;;  %v359_v63 = vadd.f32 %v358_v42, %v155_v51  ;;  %v3746_v37 = vor.u32 %v4690_v31, %v3745_v28  ;;  %v3729_v42 = vld [vmem:[#allocation4 + $0x3a8] sm:$0xf]  ;;  %v4638_v31 = vld [vmem:[#allocation4 + $0x234] sm:$0xf0] }
  0xc0   :  { %v347_v52 = vadd.f32 %v346_v47, %v154_v39  ;;  %v373_v3 = vadd.f32 %v372_v43, %v156_v55  ;;  %v3601_v39 = vld [vmem:[#allocation4 + $0x2a8] sm:$0xf]  ;;  %v4686_v43 = vld [vmem:[#allocation4 + $0x3b4] sm:$0xf0] }
  0xc1   :  { %v381_v56 = vmax.f32 %v333_v46, 0.0  ;;  %v379_v16 = vmax.f32 %v359_v63, 0.0  ;;  %v3313_v44 = vld [vmem:[#allocation4 + $0x68] sm:$0xf]  ;;  %v4614_v47 = vld [vmem:[#allocation4 + $0x174] sm:$0xf0]  ;;  %v3602_v48 = vor.u32 %v4654_v40, %v3601_v39  ;;  %v3730_v49 = vor.u32 %v4686_v43, %v3729_v42 }
  0xc2   :  { %v382_v57 = vmax.f32 %v347_v52, 0.0  ;;  %v380_v20 = vmax.f32 %v373_v3, 0.0  ;;  %v3441_v46 = vld [vmem:[#allocation4 + $0x168] sm:$0xf]  ;;  %v3363_v40 = vld [vmem:[#allocation4 + $0xd8] sm:$0xf0]  ;;  %v3666_v43 = vor.u32 %v4670_v35, %v3665_v34 }
  0xc3   :  { %v5128_v59 = vpack.c.bf16 %v381_v56, %v377_v45  ;;  %v4582_v45 = vld [vmem:[#allocation4 + $0x74] sm:$0xf0]  ;;  %v3442_v53 = vor.u32 %v4614_v47, %v3441_v46  ;;  %v3297_v56 = vld [vmem:[#allocation4 + $0x48] sm:$0xf]  ;;  %v3491_v42 = vld [vmem:[#allocation4 + $0x1d8] sm:$0xf0] }
  0xc4   :  { %v5130_v0 = vpack.c.bf16 %v382_v57, %v378_v50  ;;  %v3585_v50 = vld [vmem:[#allocation4 + $0x288] sm:$0xf]  ;;  %v3314_v52 = vor.u32 %v4582_v45, %v3313_v44  ;;  %v4578_v57 = vld [vmem:[#allocation4 + $0x54] sm:$0xf0]  ;;  %v4608_v34 = vld [vmem:[#allocation4 + $0x14c] sm:$0xf] }
  0xc5   :  { %1175 = vmatmul.bf16.vlgmr.msrb.gmra.mxu0 %v5128_v59  ;;  %v3569_v63 = vld [vmem:[#allocation4 + $0x268] sm:$0xf]  ;;  %v3298_v2 = vor.u32 %v4578_v57, %v3297_v56  ;;  %v4634_v45 = vld [vmem:[#allocation4 + $0x214] sm:$0xf0]  ;;  %v3347_v56 = vld [vmem:[#allocation4 + $0xb8] sm:$0xf0] }
  0xc6   :  { %v360_v4 = vpop.f32.mrf.mxu2  ;;  %1189 = vmatmul.bf16.vlgmr.msrb.gmra.mxu1 %v5130_v0  ;;  %1279 = vmatpush.bf16.msrb.mxu0 %v3378_v58  ;;  %v3425_v58 = vld [vmem:[#allocation4 + $0x148] sm:$0xf]  ;;  %v3570_v10 = vor.u32 %v4646_v1, %v3569_v63  ;;  %v4666_v47 = vld [vmem:[#allocation4 + $0x314] sm:$0xf0]  ;;  %v4620_v57 = vld [vmem:[#allocation4 + $0x1ac] sm:$0xf] }
  0xc7   :  { %v361_v5 = vadd.f32 %v360_v4, %v155_v51  ;;  %v374_v6 = vpop.f32.mrf.mxu3  ;;  %1293 = vmatpush.bf16.msrb.mxu1 %v3506_v60  ;;  %v4650_v51 = vld [vmem:[#allocation4 + $0x294] sm:$0xf0]  ;;  %v3697_v4 = vld [vmem:[#allocation4 + $0x368] sm:$0xf]  ;;  %v4656_v63 = vld [vmem:[#allocation4 + $0x2cc] sm:$0xf] }
  0xc8   :  { %v375_v11 = vadd.f32 %v374_v6, %v156_v55  ;;  %v4682_v55 = vld [vmem:[#allocation4 + $0x394] sm:$0xf0]  ;;  %v3586_v61 = vor.u32 %v4650_v51, %v3585_v50  ;;  %v3281_v6 = vld [vmem:[#allocation4 + $0x28] sm:$0xf]  ;;  %v3619_v1 = vld [vmem:[#allocation4 + $0x2d8] sm:$0xf0] }
  0xc9   :  { %v383_v17 = vmax.f32 %v361_v5, 0.0  ;;  %v4610_v60 = vld [vmem:[#allocation4 + $0x154] sm:$0xf0]  ;;  %v3714_v62 = vor.u32 %v4682_v55, %v3713_v54  ;;  %v3521_v44 = vld [vmem:[#allocation4 + $0x208] sm:$0xf] }
  0xca   :  { %v384_v21 = vmax.f32 %v375_v11, 0.0  ;;  %1280 = vmatpush.bf16.msrb.mxu0 %v3362_v7  ;;  %v3426_v3 = vor.u32 %v4610_v60, %v3425_v58  ;;  %v4678_v5 = vld [vmem:[#allocation4 + $0x374] sm:$0xf0]  ;;  %v3649_v46 = vld [vmem:[#allocation4 + $0x308] sm:$0xf]  ;;  %v3522_v55 = vor.u32 %v4634_v45, %v3521_v44 }
  0xcb   :  { %v5134_v23 = vpack.c.bf16 %v383_v17, %v379_v16  ;;  %1294 = vmatpush.bf16.msrb.mxu1 %v3490_v12  ;;  %v4574_v7 = vld [vmem:[#allocation4 + $0x34] sm:$0xf0]  ;;  %v3698_v11 = vor.u32 %v4678_v5, %v3697_v4  ;;  %v3553_v12 = vld [vmem:[#allocation4 + $0x248] sm:$0xf]  ;;  %v3410_v16 = vor.u32 %v4606_v9, %v3409_v8  ;;  %v4588_v54 = vld [vmem:[#allocation4 + $0xac] sm:$0xf]  ;;  %v3650_v60 = vor.u32 %v4666_v47, %v3649_v46 }
  0xcc   :  { %v5136_v29 = vpack.c.bf16 %v384_v21, %v380_v20  ;;  %v3282_v15 = vor.u32 %v4574_v7, %v3281_v6  ;;  %v4674_v17 = vld [vmem:[#allocation4 + $0x354] sm:$0xf0]  ;;  %v3393_v20 = vld [vmem:[#allocation4 + $0x108] sm:$0xf]  ;;  %v3475_v58 = vld [vmem:[#allocation4 + $0x1b8] sm:$0xf0] }
  0xcd   :  { %1203 = vmatmul.bf16.vlgmr.msrb.gmra.mxu2 %v5134_v23  ;;  %v4602_v21 = vld [vmem:[#allocation4 + $0x114] sm:$0xf0]  ;;  %v3682_v28 = vor.u32 %v4674_v17, %v3681_v14  ;;  %v4688_v4 = vld [vmem:[#allocation4 + $0x3cc] sm:$0xf]  ;;  %v3747_v5 = vld [vmem:[#allocation4 + $0x3d8] sm:$0xf0] }
  0xce   :  { %1217 = vmatmul.bf16.vlgmr.msrb.gmra.mxu3 %v5136_v29  ;;  %1307 = vmatpush.bf16.msrb.mxu2 %v3634_v22  ;;  %v4596_v22 = vld [vmem:[#allocation4 + $0xec] sm:$0xf]  ;;  %v3394_v33 = vor.u32 %v4602_v21, %v3393_v20  ;;  %v3331_v7 = vld [vmem:[#allocation4 + $0x98] sm:$0xf0] }
  0xcf   :  { %1321 = vmatpush.bf16.msrb.mxu3 %v3762_v24  ;;  %1281 = vmatpush.bf16.msrb.mxu0 %v3346_v25  ;;  %v3554_v24 = vor.u32 %v4642_v13, %v3553_v12  ;;  %v3379_v25 = vld [vmem:[#allocation4 + $0xf8] sm:$0xf0]  ;;  %v4584_v6 = vld [vmem:[#allocation4 + $0x8c] sm:$0xf] }
  0xd0   :  { %1295 = vmatpush.bf16.msrb.mxu1 %v3474_v30  ;;  %v3537_v30 = vld [vmem:[#allocation4 + $0x228] sm:$0xf]  ;;  %v4616_v8 = vld [vmem:[#allocation4 + $0x18c] sm:$0xf]  ;;  %v3459_v9 = vld [vmem:[#allocation4 + $0x198] sm:$0xf0]  ;;  %v3334_v14 = vor.u32 %v4584_v6, %v3331_v7 }
  0xd1   :  { %v3538_v39 = vor.u32 %v4638_v31, %v3537_v30  ;;  %v4652_v12 = vld [vmem:[#allocation4 + $0x2ac] sm:$0xf]  ;;  %v3603_v13 = vld [vmem:[#allocation4 + $0x2b8] sm:$0xf0] }
  0xd2   :  { %1308 = vmatpush.bf16.msrb.mxu2 %v3618_v36  ;;  %v3382_v36 = vor.u32 %v4596_v22, %v3379_v25  ;;  %v3731_v17 = vld [vmem:[#allocation4 + $0x3b8] sm:$0xf0]  ;;  %v4612_v20 = vld [vmem:[#allocation4 + $0x16c] sm:$0xf]  ;;  %v3606_v22 = vor.u32 %v4652_v12, %v3603_v13 }
  0xd3   :  { %1322 = vmatpush.bf16.msrb.mxu3 %v3746_v37  ;;  %1282 = vmatpush.bf16.msrb.mxu0 %v3330_v38  ;;  %v3510_v37 = vor.u32 %v4628_v26, %v3507_v27  ;;  %v4592_v38 = vld [vmem:[#allocation4 + $0xcc] sm:$0xf]  ;;  %v3443_v21 = vld [vmem:[#allocation4 + $0x178] sm:$0xf0]  ;;  %v3318_v27 = vor.u32 %v4580_v18, %v3315_v19 }
  0xd4   :  { %1296 = vmatpush.bf16.msrb.mxu1 %v3458_v41  ;;  %v4624_v41 = vld [vmem:[#allocation4 + $0x1cc] sm:$0xf]  ;;  %v3366_v50 = vor.u32 %v4592_v38, %v3363_v40  ;;  %v3587_v26 = vld [vmem:[#allocation4 + $0x298] sm:$0xf0] }
  0xd5   :  { %1231 = vmatmul.bf16.vlgmr.msra.gmra.mxu0 %v5128_v59  ;;  %v3494_v51 = vor.u32 %v4624_v41, %v3491_v42  ;;  %v4648_v25 = vld [vmem:[#allocation4 + $0x28c] sm:$0xf]  ;;  %v3715_v31 = vld [vmem:[#allocation4 + $0x398] sm:$0xf0] }
  0xd6   :  { %1309 = vmatpush.bf16.msrb.mxu2 %v3602_v48  ;;  %1245 = vmatmul.bf16.vlgmr.msra.gmra.mxu1 %v5130_v0  ;;  %v4660_v48 = vld [vmem:[#allocation4 + $0x2ec] sm:$0xf]  ;;  %v3427_v35 = vld [vmem:[#allocation4 + $0x158] sm:$0xf0] }
  0xd7   :  { %1323 = vmatpush.bf16.msrb.mxu3 %v3730_v49  ;;  %1283 = vmatpush.bf16.msrb.mxu0 %v3314_v52  ;;  %v3635_v49 = vld [vmem:[#allocation4 + $0x2f8] sm:$0xf0]  ;;  %v4692_v52 = vld [vmem:[#allocation4 + $0x3ec] sm:$0xf]  ;;  %v3430_v41 = vor.u32 %v4608_v34, %v3427_v35 }
  0xd8   :  { %1297 = vmatpush.bf16.msrb.mxu1 %v3442_v53  ;;  %v3763_v53 = vld [vmem:[#allocation4 + $0x3f8] sm:$0xf0]  ;;  %v4680_v30 = vld [vmem:[#allocation4 + $0x38c] sm:$0xf] }
  0xd9   :  { %v4644_v38 = vld [vmem:[#allocation4 + $0x26c] sm:$0xf]  ;;  %v3283_v45 = vld [vmem:[#allocation4 + $0x38] sm:$0xf0] }
  0xda   :  { %1310 = vmatpush.bf16.msrb.mxu2 %v3586_v61  ;;  %v3638_v61 = vor.u32 %v4660_v48, %v3635_v49  ;;  %v4676_v42 = vld [vmem:[#allocation4 + $0x36c] sm:$0xf]  ;;  %v3411_v47 = vld [vmem:[#allocation4 + $0x138] sm:$0xf0] }
  0xdb   :  { %1324 = vmatpush.bf16.msrb.mxu3 %v3714_v62  ;;  %1284 = vmatpush.bf16.msrb.mxu0 %v3298_v2  ;;  %v3766_v62 = vor.u32 %v4692_v52, %v3763_v53  ;;  %v3350_v2 = vor.u32 %v4588_v54, %v3347_v56  ;;  %v4572_v44 = vld [vmem:[#allocation4 + $0x2c] sm:$0xf]  ;;  %v3523_v19 = vld [vmem:[#allocation4 + $0x218] sm:$0xf0] }
  0xdc   :  { %1298 = vmatpush.bf16.msrb.mxu1 %v3426_v3  ;;  %v3478_v3 = vor.u32 %v4620_v57, %v3475_v58  ;;  %v4604_v46 = vld [vmem:[#allocation4 + $0x12c] sm:$0xf]  ;;  %v3286_v53 = vor.u32 %v4572_v44, %v3283_v45  ;;  %v3267_v57 = vld [vmem:[#allocation4 + $0x18] sm:$0xf0]  ;;  %v3769_v44 = vld [vmem:[#allocation6] sm:$0xf] }
  0xdd   :  { %1259 = vmatmul.bf16.vlgmr.msra.gmra.mxu2 %v5134_v23  ;;  %v4672_v52 = vld [vmem:[#allocation4 + $0x34c] sm:$0xf]  ;;  %v3414_v54 = vor.u32 %v4604_v46, %v3411_v47  ;;  %v3913_v45 = vld [vmem:[#allocation6 + $0x120] sm:$0xf] }
  0xde   :  { %1273 = vmatmul.bf16.vlgmr.msra.gmra.mxu3 %v5136_v29  ;;  %1311 = vmatpush.bf16.msrb.mxu2 %v3570_v10  ;;  %v3622_v10 = vor.u32 %v4656_v63, %v3619_v1  ;;  %v4568_v56 = vld [vmem:[#allocation4 + $0xc] sm:$0xf]  ;;  %v4717_v63 = vld [vmem:[#allocation6 + $0xb0] sm:$0xf0]  ;;  %v3949_v1 = vld [vmem:[#allocation6 + $0x168] sm:$0xf] }
  0xdf   :  { %1325 = vmatpush.bf16.msrb.mxu3 %v3698_v11  ;;  %1285 = vmatpush.bf16.msrb.mxu0 %v3282_v15  ;;  %v3750_v11 = vor.u32 %v4688_v4, %v3747_v5  ;;  %v3462_v15 = vor.u32 %v4616_v8, %v3459_v9  ;;  %v4600_v58 = vld [vmem:[#allocation4 + $0x10c] sm:$0xf]  ;;  %v3539_v5 = vld [vmem:[#allocation4 + $0x238] sm:$0xf0]  ;;  %v3270_v6 = vor.u32 %v4568_v56, %v3267_v57  ;;  %v4713_v56 = vld [vmem:[#allocation6 + $0x94] sm:$0xf] }
  0xe0   :  { %1299 = vmatpush.bf16.msrb.mxu1 %v3410_v16  ;;  %v4684_v16 = vld [vmem:[#allocation4 + $0x3ac] sm:$0xf]  ;;  %v3667_v9 = vld [vmem:[#allocation4 + $0x338] sm:$0xf0]  ;;  %v3843_v57 = vld [vmem:[#allocation6 + $0x9c] sm:$0xf0] }
  0xe1   :  { %v4636_v4 = vld [vmem:[#allocation4 + $0x22c] sm:$0xf] }
  0xe2   :  { %1312 = vmatpush.bf16.msrb.mxu2 %v3554_v24  ;;  %v3734_v24 = vor.u32 %v4684_v16, %v3731_v17  ;;  %v4668_v8 = vld [vmem:[#allocation4 + $0x32c] sm:$0xf]  ;;  %v3542_v13 = vor.u32 %v4636_v4, %v3539_v5  ;;  %v4738_v16 = vld [vmem:[#allocation6 + $0x158] sm:$0xf0]  ;;  %v3831_v4 = vld [vmem:[#allocation6 + $0x84] sm:$0xf0] }
  0xe3   :  { %1326 = vmatpush.bf16.msrb.mxu3 %v3682_v28  ;;  %1286 = vmatpush.bf16.msrb.mxu0 %v3266_v32  ;;  %v3446_v28 = vor.u32 %v4612_v20, %v3443_v21  ;;  %v4576_v32 = vld [vmem:[#allocation4 + $0x4c] sm:$0xf]  ;;  %v3670_v17 = vor.u32 %v4668_v8, %v3667_v9  ;;  %v3651_v21 = vld [vmem:[#allocation4 + $0x318] sm:$0xf0]  ;;  %v4723_v8 = vld [vmem:[#allocation6 + $0xe0] sm:$0xf0] }
  0xe4   :  { %1300 = vmatpush.bf16.msrb.mxu1 %v3394_v33  ;;  %v3299_v33 = vld [vmem:[#allocation4 + $0x58] sm:$0xf0]  ;;  %v4632_v18 = vld [vmem:[#allocation4 + $0x20c] sm:$0xf]  ;;  %v4021_v9 = vld [vmem:[#allocation6 + $0x1f8] sm:$0xf] }
  0xe5   :  { %v3302_v40 = vor.u32 %v4576_v32, %v3299_v33  ;;  %v4664_v20 = vld [vmem:[#allocation4 + $0x30c] sm:$0xf]  ;;  %v3817_v33 = vld [vmem:[#allocation6 + $0x60] sm:$0xf] }
  0xe6   :  { %1313 = vmatpush.bf16.msrb.mxu2 %v3538_v39  ;;  %1287 = vmatmul.bf16.vlgmr.msrb.gmra.mxu0 %v5128_v59  ;;  %v3571_v39 = vld [vmem:[#allocation4 + $0x278] sm:$0xf0]  ;;  %v4708_v34 = vld [vmem:[#allocation6 + $0x68] sm:$0xf0] }
  0xe7   :  { %1335 = vmatpush.bf16.msra.mxu0 %v3382_v36  ;;  %1327 = vmatpush.bf16.msrb.mxu3 %v3666_v43  ;;  %v3590_v36 = vor.u32 %v4648_v25, %v3587_v26  ;;  %v3699_v43 = vld [vmem:[#allocation4 + $0x378] sm:$0xf0]  ;;  %v3574_v48 = vor.u32 %v4644_v38, %v3571_v39  ;;  %v3526_v25 = vor.u32 %v4632_v18, %v3523_v19  ;;  %v3829_v26 = vld [vmem:[#allocation6 + $0x78] sm:$0xf]  ;;  %v4732_v47 = vld [vmem:[#allocation6 + $0x128] sm:$0xf0] }
  0xe8   :  { %1349 = vmatpush.bf16.msra.mxu1 %v3510_v37  ;;  %v3718_v37 = vor.u32 %v4680_v30, %v3715_v31  ;;  %v3702_v49 = vor.u32 %v4676_v42, %v3699_v43  ;;  %v3925_v30 = vld [vmem:[#allocation6 + $0x138] sm:$0xf]  ;;  %v4735_v31 = vld [vmem:[#allocation6 + $0x140] sm:$0xf0]  ;;  %v4702_v39 = vld [vmem:[#allocation6 + $0x38] sm:$0xf0] }
  0xe9   :  { %1301 = vmatmul.bf16.vlgmr.msrb.gmra.mxu1 %v5130_v0  ;;  %v3926_v35 = vor.u32 %v4735_v31, %v3925_v30  ;;  %v4699_v42 = vld [vmem:[#allocation6 + $0x20] sm:$0xf0]  ;;  %v4009_v18 = vld [vmem:[#allocation6 + $0x1e0] sm:$0xf]  ;;  %v3997_v30 = vld [vmem:[#allocation6 + $0x1c8] sm:$0xf] }
  0xea   :  { %1314 = vmatpush.bf16.msrb.mxu2 %v3522_v55  ;;  %v3683_v55 = vld [vmem:[#allocation4 + $0x358] sm:$0xf0]  ;;  %v4753_v31 = vld [vmem:[#allocation6 + $0x1d0] sm:$0xf0] }
  0xeb   :  { %1336 = vmatpush.bf16.msra.mxu0 %v3366_v50  ;;  %1328 = vmatpush.bf16.msrb.mxu3 %v3650_v60  ;;  %v4640_v50 = vld [vmem:[#allocation4 + $0x24c] sm:$0xf]  ;;  %v3395_v60 = vld [vmem:[#allocation4 + $0x118] sm:$0xf0] }
  0xec   :  { %1350 = vmatpush.bf16.msra.mxu1 %v3494_v51  ;;  %v3555_v51 = vld [vmem:[#allocation4 + $0x258] sm:$0xf0]  ;;  %v3398_v7 = vor.u32 %v4600_v58, %v3395_v60  ;;  %v3846_v60 = vor.u32 %v4713_v56, %v3843_v57  ;;  %v4141_v56 = vld [vmem:[#allocation6 + $0x2e8] sm:$0xf] }
  0xed   :  { %1315 = vmatmul.bf16.vlgmr.msrb.gmra.mxu2 %v5134_v23 }
  0xee   :  { %1363 = vmatpush.bf16.msra.mxu2 %v3638_v61  ;;  %1329 = vmatmul.bf16.vlgmr.msrb.gmra.mxu3 %v5136_v29  ;;  %v3853_v61 = vld [vmem:[#allocation6 + $0xa8] sm:$0xf] }
  0xef   :  { %1377 = vmatpush.bf16.msra.mxu3 %v3766_v62  ;;  %1337 = vmatpush.bf16.msra.mxu0 %v3350_v2  ;;  %v3558_v62 = vor.u32 %v4640_v50, %v3555_v51  ;;  %v4741_v2 = vld [vmem:[#allocation6 + $0x170] sm:$0xf0]  ;;  %v3901_v51 = vld [vmem:[#allocation6 + $0x108] sm:$0xf] }
  0xf0   :  { %1351 = vmatpush.bf16.msra.mxu1 %v3478_v3  ;;  %v3686_v3 = vor.u32 %v4672_v52, %v3683_v55  ;;  %v3950_v12 = vor.u32 %v4741_v2, %v3949_v1  ;;  %v4729_v52 = vld [vmem:[#allocation6 + $0x110] sm:$0xf0]  ;;  %v4762_v2 = vld [vmem:[#allocation6 + $0x218] sm:$0xf0] }
  0xf1   :  { %v4765_v55 = vld [vmem:[#allocation6 + $0x230] sm:$0xf0] }
  0xf2   :  { %1364 = vmatpush.bf16.msra.mxu2 %v3622_v10  ;;  %v3854_v10 = vor.u32 %v4717_v63, %v3853_v61  ;;  %v3889_v61 = vld [vmem:[#allocation6 + $0xf0] sm:$0xf] }
  0xf3   :  { %1378 = vmatpush.bf16.msra.mxu3 %v3750_v11  ;;  %1338 = vmatpush.bf16.msra.mxu0 %v3334_v14  ;;  %v3841_v11 = vld [vmem:[#allocation6 + $0x90] sm:$0xf]  ;;  %v4714_v14 = vld [vmem:[#allocation6 + $0x98] sm:$0xf0] }
  0xf4   :  { %1352 = vmatpush.bf16.msra.mxu1 %v3462_v15  ;;  %v3937_v15 = vld [vmem:[#allocation6 + $0x150] sm:$0xf] }
  0xf5   :  { %v4033_v63 = vld [vmem:[#allocation6 + $0x210] sm:$0xf] }
  0xf6   :  { %1365 = vmatpush.bf16.msra.mxu2 %v3606_v22  ;;  %v3842_v22 = vor.u32 %v4714_v14, %v3841_v11  ;;  %v4034_v5 = vor.u32 %v4762_v2, %v4033_v63  ;;  %v4759_v11 = vld [vmem:[#allocation6 + $0x200] sm:$0xf0]  ;;  %v4764_v2 = vld [vmem:[#allocation6 + $0x22c] sm:$0xf] }
  0xf7   :  { %1379 = vmatpush.bf16.msra.mxu3 %v3734_v24  ;;  %1339 = vmatpush.bf16.msra.mxu0 %v3318_v27  ;;  %v3938_v24 = vor.u32 %v4738_v16, %v3937_v15  ;;  %v4711_v27 = vld [vmem:[#allocation6 + $0x80] sm:$0xf0]  ;;  %v4022_v14 = vor.u32 %v4759_v11, %v4021_v9  ;;  %v3865_v16 = vld [vmem:[#allocation6 + $0xc0] sm:$0xf]  ;;  %v4725_v9 = vld [vmem:[#allocation6 + $0xf4] sm:$0xf] }
  0xf8   :  { %1353 = vmatpush.bf16.msra.mxu1 %v3446_v28  ;;  %v3654_v28 = vor.u32 %v4664_v20, %v3651_v21  ;;  %v3830_v32 = vor.u32 %v4711_v27, %v3829_v26  ;;  %v4756_v20 = vld [vmem:[#allocation6 + $0x1e8] sm:$0xf0]  ;;  %v3951_v27 = vld [vmem:[#allocation6 + $0x174] sm:$0xf0]  ;;  %v4761_v11 = vld [vmem:[#allocation6 + $0x214] sm:$0xf] }
  0xf9   :  { %v4704_v21 = vld [vmem:[#allocation6 + $0x4c] sm:$0xf] }
  0xfa   :  { %1366 = vmatpush.bf16.msra.mxu2 %v3590_v36  ;;  %v3818_v36 = vor.u32 %v4708_v34, %v3817_v33  ;;  %v4740_v26 = vld [vmem:[#allocation6 + $0x16c] sm:$0xf]  ;;  %v4701_v33 = vld [vmem:[#allocation6 + $0x34] sm:$0xf]  ;;  %v3795_v34 = vld [vmem:[#allocation6 + $0x3c] sm:$0xf0] }
  0xfb   :  { %1380 = vmatpush.bf16.msra.mxu3 %v3718_v37  ;;  %1340 = vmatpush.bf16.msra.mxu0 %v3302_v40  ;;  %v4705_v37 = vld [vmem:[#allocation6 + $0x50] sm:$0xf0] }
  0xfc   :  { %1354 = vmatpush.bf16.msra.mxu1 %v3430_v41  ;;  %v3781_v41 = vld [vmem:[#allocation6 + $0x18] sm:$0xf] }
  0xfd   :  { %v3782_v43 = vor.u32 %v4699_v42, %v3781_v41  ;;  %v3783_v41 = vld [vmem:[#allocation6 + $0x24] sm:$0xf0]  ;;  %v4734_v42 = vld [vmem:[#allocation6 + $0x13c] sm:$0xf] }
  0xfe   :  { %1367 = vmatpush.bf16.msra.mxu2 %v3574_v48  ;;  %v3855_v48 = vld [vmem:[#allocation6 + $0xb4] sm:$0xf0] }
  0xff   :  { %1381 = vmatpush.bf16.msra.mxu3 %v3702_v49  ;;  %1341 = vmatpush.bf16.msra.mxu0 %v3286_v53  ;;  %v3914_v49 = vor.u32 %v4732_v47, %v3913_v45  ;;  %v4045_v53 = vld [vmem:[#allocation6 + $0x228] sm:$0xf]  ;;  %v3973_v45 = vld [vmem:[#allocation6 + $0x198] sm:$0xf] }
 0x100   :  { %1355 = vmatpush.bf16.msra.mxu1 %v3414_v54  ;;  %v3902_v54 = vor.u32 %v4729_v52, %v3901_v51  ;;  %v4046_v58 = vor.u32 %v4765_v55, %v4045_v53  ;;  %v3915_v51 = vld [vmem:[#allocation6 + $0x12c] sm:$0xf0]  ;;  %v4744_v55 = vld [vmem:[#allocation6 + $0x188] sm:$0xf0] }
 0x102   :  { %1368 = vmatpush.bf16.msra.mxu2 %v3558_v62  ;;  %v4726_v62 = vld [vmem:[#allocation6 + $0xf8] sm:$0xf0] }
 0x103   :  { %1382 = vmatpush.bf16.msra.mxu3 %v3686_v3  ;;  %1342 = vmatpush.bf16.msra.mxu0 %v3270_v6  ;;  %v3890_v1 = vor.u32 %v4726_v62, %v3889_v61  ;;  %v4710_v3 = vld [vmem:[#allocation6 + $0x7c] sm:$0xf]  ;;  %v3903_v61 = vld [vmem:[#allocation6 + $0x114] sm:$0xf0] }
 0x104   :  { %1356 = vmatpush.bf16.msra.mxu1 %v3398_v7  ;;  %v3834_v6 = vor.u32 %v4710_v3, %v3831_v4  ;;  %v3877_v7 = vld [vmem:[#allocation6 + $0xd8] sm:$0xf] }
 0x105   :  { %v4047_v3 = vld [vmem:[#allocation6 + $0x234] sm:$0xf0] }
 0x106   :  { %1369 = vmatpush.bf16.msra.mxu2 %v3542_v13  ;;  %1343 = vmatmul.bf16.vlgmr.msra.gmra.mxu0 %v5128_v59  ;;  %v3805_v59 = vld [vmem:[#allocation6 + $0x48] sm:$0xf]  ;;  %v3819_v13 = vld [vmem:[#allocation6 + $0x6c] sm:$0xf0]  ;;  %v4050_v4 = vor.u32 %v4764_v2, %v4047_v3  ;;  %v4771_v2 = vld [vmem:[#allocation6 + $0x260] sm:$0xf0] }
 0x107   :  { %2051 = vmatpush.bf16.msrb.mxu0 %v3854_v10  ;;  %1383 = vmatpush.bf16.msra.mxu3 %v3670_v17  ;;  %v3806_v38 = vor.u32 %v4705_v37, %v3805_v59  ;;  %v3878_v10 = vor.u32 %v4723_v8, %v3877_v7  ;;  %v4720_v17 = vld [vmem:[#allocation6 + $0xc8] sm:$0xf0]  ;;  %v3939_v59 = vld [vmem:[#allocation6 + $0x15c] sm:$0xf0]  ;;  %v4786_v7 = vld [vmem:[#allocation6 + $0x2d8] sm:$0xf0] }
 0x108   :  { %2065 = vmatpush.bf16.msrb.mxu1 %v3950_v12  ;;  %v4707_v12 = vld [vmem:[#allocation6 + $0x64] sm:$0xf]  ;;  %v3866_v19 = vor.u32 %v4720_v17, %v3865_v16  ;;  %v4117_v17 = vld [vmem:[#allocation6 + $0x2b8] sm:$0xf] }
 0x109   :  { %1357 = vmatmul.bf16.vlgmr.msra.gmra.mxu1 %v5130_v0  ;;  %v3793_v0 = vld [vmem:[#allocation6 + $0x30] sm:$0xf]  ;;  %v3822_v15 = vor.u32 %v4707_v12, %v3819_v13  ;;  %v4035_v13 = vld [vmem:[#allocation6 + $0x21c] sm:$0xf0] }
 0x10a   :  { %1370 = vmatpush.bf16.msra.mxu2 %v3526_v25  ;;  %v3794_v40 = vor.u32 %v4702_v39, %v3793_v0  ;;  %v4750_v0 = vld [vmem:[#allocation6 + $0x1b8] sm:$0xf0] }
 0x10b   :  { %2052 = vmatpush.bf16.msrb.mxu0 %v3842_v22  ;;  %1384 = vmatpush.bf16.msra.mxu3 %v3654_v28  ;;  %v3807_v22 = vld [vmem:[#allocation6 + $0x54] sm:$0xf0]  ;;  %v3954_v28 = vor.u32 %v4740_v26, %v3951_v27 }
 0x10c   :  { %2066 = vmatpush.bf16.msrb.mxu1 %v3938_v24  ;;  %v4010_v24 = vor.u32 %v4756_v20, %v4009_v18  ;;  %v3810_v25 = vor.u32 %v4704_v21, %v3807_v22  ;;  %v4783_v18 = vld [vmem:[#allocation6 + $0x2c0] sm:$0xf0]  ;;  %v4722_v20 = vld [vmem:[#allocation6 + $0xdc] sm:$0xf]  ;;  %v3879_v21 = vld [vmem:[#allocation6 + $0xe4] sm:$0xf0] }
 0x10d   :  { %1371 = vmatmul.bf16.vlgmr.msra.gmra.mxu2 %v5134_v23  ;;  %v4696_v23 = vld [vmem:[#allocation6 + $0x8] sm:$0xf0]  ;;  %v4758_v22 = vld [vmem:[#allocation6 + $0x1fc] sm:$0xf] }
 0x10e   :  { %1385 = vmatmul.bf16.vlgmr.msra.gmra.mxu3 %v5136_v29  ;;  %v3770_v46 = vor.u32 %v4696_v23, %v3769_v44  ;;  %v4716_v29 = vld [vmem:[#allocation6 + $0xac] sm:$0xf]  ;;  %2079 = vmatpush.bf16.msrb.mxu2 %v4046_v58  ;;  %v3927_v44 = vld [vmem:[#allocation6 + $0x144] sm:$0xf0]  ;;  %v4789_v58 = vld [vmem:[#allocation6 + $0x2f0] sm:$0xf0] }
 0x10f   :  { %2053 = vmatpush.bf16.msrb.mxu0 %v3830_v32  ;;  %v3858_v50 = vor.u32 %v4716_v29, %v3855_v48  ;;  %v3998_v32 = vor.u32 %v4753_v31, %v3997_v30  ;;  %v3930_v23 = vor.u32 %v4734_v42, %v3927_v44  ;;  %v4695_v29 = vld [vmem:[#allocation6 + $0x4] sm:$0xf]  ;;  %v3771_v48 = vld [vmem:[#allocation6 + $0xc] sm:$0xf0]  ;;  %v4142_v63 = vor.u32 %v4789_v58, %v4141_v56  ;;  %v4105_v30 = vld [vmem:[#allocation6 + $0x2a0] sm:$0xf] }
 0x110   :  { %2067 = vmatpush.bf16.msrb.mxu1 %v3926_v35  ;;  %v4737_v35 = vld [vmem:[#allocation6 + $0x154] sm:$0xf]  ;;  %v4780_v31 = vld [vmem:[#allocation6 + $0x2a8] sm:$0xf0]  ;;  %v4093_v42 = vld [vmem:[#allocation6 + $0x288] sm:$0xf] }
 0x111   :  { %v3942_v37 = vor.u32 %v4737_v35, %v3939_v59  ;;  %2093 = vmatpush.bf16.msrb.mxu3 %v4142_v63  ;;  %v3867_v35 = vld [vmem:[#allocation6 + $0xcc] sm:$0xf0]  ;;  %v4718_v63 = vld [vmem:[#allocation6 + $0xb8] sm:$0xf0] }
 0x112   :  { %2080 = vmatpush.bf16.msrb.mxu2 %v4034_v5  ;;  %v5155_v5 = vld [vmem:[%s5214_s4] sm:$0xf] }
 0x113   :  { %2054 = vmatpush.bf16.msrb.mxu0 %v3818_v36  ;;  %v3798_v36 = vor.u32 %v4701_v33, %v3795_v34  ;;  %v4106_v33 = vor.u32 %v4780_v31, %v4105_v30  ;;  %v4719_v34 = vld [vmem:[#allocation6 + $0xc4] sm:$0xf] }
 0x114   :  { %2068 = vmatpush.bf16.msrb.mxu1 %v3914_v49  ;;  %v4731_v49 = vld [vmem:[#allocation6 + $0x124] sm:$0xf] }
 0x115   :  { %v3918_v52 = vor.u32 %v4731_v49, %v3915_v51  ;;  %v4774_v49 = vld [vmem:[#allocation6 + $0x278] sm:$0xf0] }
 0x116   :  { %2081 = vmatpush.bf16.msrb.mxu2 %v4022_v14  ;;  %v4038_v14 = vor.u32 %v4761_v11, %v4035_v13 }
 0x117   :  { %2055 = vmatpush.bf16.msrb.mxu0 %v3806_v38  ;;  %v3985_v38 = vld [vmem:[#allocation6 + $0x1b0] sm:$0xf] }
 0x118   :  { %2069 = vmatpush.bf16.msrb.mxu1 %v3902_v54  ;;  %v3986_v39 = vor.u32 %v4750_v0, %v3985_v38  ;;  %v3961_v54 = vld [vmem:[#allocation6 + $0x180] sm:$0xf]  ;;  %v4011_v38 = vld [vmem:[#allocation6 + $0x1ec] sm:$0xf0] }
 0x119   :  { %v3962_v57 = vor.u32 %v4744_v55, %v3961_v54 }
 0x11a   :  { %2082 = vmatpush.bf16.msrb.mxu2 %v4010_v24  ;;  %v3882_v24 = vor.u32 %v4722_v20, %v3879_v21  ;;  %v4743_v20 = vld [vmem:[#allocation6 + $0x184] sm:$0xf]  ;;  %v3963_v21 = vld [vmem:[#allocation6 + $0x18c] sm:$0xf0] }
 0x11b   :  { %2056 = vmatpush.bf16.msrb.mxu0 %v3794_v40  ;;  %v4698_v40 = vld [vmem:[#allocation6 + $0x1c] sm:$0xf] }
 0x11c   :  { %2070 = vmatpush.bf16.msrb.mxu1 %v3890_v1 }
 0x11e   :  { %2083 = vmatpush.bf16.msrb.mxu2 %v3998_v32 }
 0x11f   :  { %2057 = vmatpush.bf16.msrb.mxu0 %v3782_v43  ;;  %v3786_v43 = vor.u32 %v4698_v40, %v3783_v41 }
 0x120   :  { %2071 = vmatpush.bf16.msrb.mxu1 %v3878_v10  ;;  %v3891_v10 = vld [vmem:[#allocation6 + $0xfc] sm:$0xf0] }
 0x121   :  { %v3894_v12 = vor.u32 %v4725_v9, %v3891_v10 }
 0x122   :  { %2084 = vmatpush.bf16.msrb.mxu2 %v3986_v39 }
 0x123   :  { %2058 = vmatpush.bf16.msrb.mxu0 %v3770_v46  ;;  %v4747_v46 = vld [vmem:[#allocation6 + $0x1a0] sm:$0xf0] }
 0x124   :  { %2072 = vmatpush.bf16.msrb.mxu1 %v3866_v19  ;;  %v3974_v47 = vor.u32 %v4747_v46, %v3973_v45  ;;  %v4118_v19 = vor.u32 %v4783_v18, %v4117_v17  ;;  %v3999_v45 = vld [vmem:[#allocation6 + $0x1d4] sm:$0xf0]  ;;  %v4768_v17 = vld [vmem:[#allocation6 + $0x248] sm:$0xf0] }
 0x126   :  { %2085 = vmatpush.bf16.msrb.mxu2 %v3974_v47 }
 0x127   :  { %2107 = vmatpush.bf16.msra.mxu0 %v3858_v50  ;;  %v3774_v50 = vor.u32 %v4695_v29, %v3771_v48  ;;  %v4081_v48 = vld [vmem:[#allocation6 + $0x270] sm:$0xf] }
 0x128   :  { %2121 = vmatpush.bf16.msra.mxu1 %v3954_v28  ;;  %v4082_v51 = vor.u32 %v4774_v49, %v4081_v48  ;;  %v3813_v48 = vld [vmem:[#allocation6 + $0x50] sm:$0xf] }
 0x12a   :  { %2086 = vmatpush.bf16.msrb.mxu2 %v3962_v57 }
 0x12b   :  { %2108 = vmatpush.bf16.msra.mxu0 %v3846_v60  ;;  %v4728_v60 = vld [vmem:[#allocation6 + $0x10c] sm:$0xf] }
 0x12c   :  { %2122 = vmatpush.bf16.msra.mxu1 %v3942_v37  ;;  %v3906_v1 = vor.u32 %v4728_v60, %v3903_v61  ;;  %v3870_v37 = vor.u32 %v4719_v34, %v3867_v35  ;;  %v520_v60 = vperm.slane %v5155_v5, 1  ;;  %v3861_v61 = vld [vmem:[#allocation6 + $0xb0] sm:$0xf]  ;;  %v4712_v34 = vld [vmem:[#allocation6 + $0x88] sm:$0xf0] }
 0x12d   :  { %v3862_v11 = vor.u32 %v4718_v63, %v3861_v61  ;;  %v4785_v35 = vld [vmem:[#allocation6 + $0x2d4] sm:$0xf]  ;;  %v3801_v63 = vld [vmem:[#allocation6 + $0x38] sm:$0xf] }
 0x12e   :  { %2135 = vmatpush.bf16.msra.mxu2 %v4050_v4 }
 0x12f   :  { %2109 = vmatpush.bf16.msra.mxu0 %v3834_v6  ;;  %v4129_v6 = vld [vmem:[#allocation6 + $0x2d0] sm:$0xf] }
 0x130   :  { %2123 = vmatpush.bf16.msra.mxu1 %v3930_v23  ;;  %v4130_v8 = vor.u32 %v4786_v7, %v4129_v6  ;;  %v4752_v23 = vld [vmem:[#allocation6 + $0x1cc] sm:$0xf]  ;;  %v4746_v6 = vld [vmem:[#allocation6 + $0x19c] sm:$0xf]  ;;  %v3975_v7 = vld [vmem:[#allocation6 + $0x1a4] sm:$0xf0] }
 0x131   :  { %v4002_v47 = vor.u32 %v4752_v23, %v3999_v45  ;;  %v3978_v10 = vor.u32 %v4746_v6, %v3975_v7 }
 0x132   :  { %2094 = vmatpush.bf16.msrb.mxu3 %v4130_v8  ;;  %2136 = vmatpush.bf16.msra.mxu2 %v4038_v14 }
 0x133   :  { %2110 = vmatpush.bf16.msra.mxu0 %v3822_v15  ;;  %v519_v15 = vperm.slane %v5155_v5, 0 }
 0x134   :  { %2124 = vmatpush.bf16.msra.mxu1 %v3918_v52  ;;  %v4749_v52 = vld [vmem:[#allocation6 + $0x1b4] sm:$0xf] }
 0x136   :  { %2095 = vmatpush.bf16.msrb.mxu3 %v4118_v19 }
 0x137   :  { %2111 = vmatpush.bf16.msra.mxu0 %v3810_v25  ;;  %v4023_v25 = vld [vmem:[#allocation6 + $0x204] sm:$0xf0] }
 0x138   :  { %2125 = vmatpush.bf16.msra.mxu1 %v3906_v1  ;;  %v4026_v26 = vor.u32 %v4758_v22, %v4023_v25  ;;  %v4069_v1 = vld [vmem:[#allocation6 + $0x258] sm:$0xf]  ;;  %v4788_v25 = vld [vmem:[#allocation6 + $0x2ec] sm:$0xf] }
 0x139   :  { %v4070_v4 = vor.u32 %v4771_v2, %v4069_v1  ;;  %v4703_v2 = vld [vmem:[#allocation6 + $0x40] sm:$0xf0] }
 0x13a   :  { %2137 = vmatpush.bf16.msra.mxu2 %v4026_v26  ;;  %2096 = vmatpush.bf16.msrb.mxu3 %v4106_v33  ;;  %v4143_v26 = vld [vmem:[#allocation6 + $0x2f4] sm:$0xf0]  ;;  %v3837_v33 = vld [vmem:[#allocation6 + $0x80] sm:$0xf] }
 0x13b   :  { %2112 = vmatpush.bf16.msra.mxu0 %v3798_v36  ;;  %v4755_v36 = vld [vmem:[#allocation6 + $0x1e4] sm:$0xf] }
 0x13c   :  { %2126 = vmatpush.bf16.msra.mxu1 %v3894_v12  ;;  %v4014_v0 = vor.u32 %v4755_v36, %v4011_v38  ;;  %v3849_v12 = vld [vmem:[#allocation6 + $0x98] sm:$0xf]  ;;  %v4131_v36 = vld [vmem:[#allocation6 + $0x2dc] sm:$0xf0] }
 0x13e   :  { %2138 = vmatpush.bf16.msra.mxu2 %v4014_v0  ;;  %v3838_v0 = vor.u32 %v4712_v34, %v3837_v33  ;;  %v3921_v33 = vld [vmem:[#allocation6 + $0x128] sm:$0xf]  ;;  %v4733_v34 = vld [vmem:[#allocation6 + $0x130] sm:$0xf0] }
 0x13f   :  { %2113 = vmatpush.bf16.msra.mxu0 %v3786_v43  ;;  %v4777_v43 = vld [vmem:[#allocation6 + $0x290] sm:$0xf0] }
 0x140   :  { %2127 = vmatpush.bf16.msra.mxu1 %v3882_v24  ;;  %v4094_v44 = vor.u32 %v4777_v43, %v4093_v42  ;;  %v3966_v24 = vor.u32 %v4743_v20, %v3963_v21  ;;  %v4782_v43 = vld [vmem:[#allocation6 + $0x2bc] sm:$0xf] }
 0x142   :  { %v1176_v53 = vpop.f32.mrf.mxu0  ;;  %2097 = vmatpush.bf16.msrb.mxu3 %v4094_v44  ;;  %2139 = vmatpush.bf16.msra.mxu2 %v4002_v47  ;;  %v4119_v44 = vld [vmem:[#allocation6 + $0x2c4] sm:$0xf0] }
 0x143   :  { %2114 = vmatpush.bf16.msra.mxu0 %v3774_v50  ;;  %v1190_v62 = vpop.f32.mrf.mxu1  ;;  %v1177_v27 = vadd.f32 %v1176_v53, %v519_v15  ;;  %v3987_v53 = vld [vmem:[#allocation6 + $0x1bc] sm:$0xf0]  ;;  %v4122_v47 = vor.u32 %v4782_v43, %v4119_v44  ;;  %v3909_v43 = vld [vmem:[#allocation6 + $0x110] sm:$0xf]  ;;  %v4730_v44 = vld [vmem:[#allocation6 + $0x118] sm:$0xf0] }
 0x144   :  { %2128 = vmatpush.bf16.msra.mxu1 %v3870_v37  ;;  %v3990_v58 = vor.u32 %v4749_v52, %v3987_v53  ;;  %v4134_v37 = vor.u32 %v4785_v35, %v4131_v36  ;;  %v4742_v52 = vld [vmem:[#allocation6 + $0x178] sm:$0xf0]  ;;  %v521_v53 = vperm.slane %v5155_v5, 2 }
 0x145   :  { %v1191_v39 = vadd.f32 %v1190_v62, %v1177_v27  ;;  %v4770_v36 = vld [vmem:[#allocation6 + $0x25c] sm:$0xf] }
 0x146   :  { %2098 = vmatpush.bf16.msrb.mxu3 %v4082_v51  ;;  %2140 = vmatpush.bf16.msra.mxu2 %v3990_v58  ;;  %v3957_v51 = vld [vmem:[#allocation6 + $0x170] sm:$0xf] }
 0x14a   :  { %v1178_v16 = vpop.f32.mrf.mxu0  ;;  %2099 = vmatpush.bf16.msrb.mxu3 %v4070_v4  ;;  %2141 = vmatpush.bf16.msra.mxu2 %v3978_v10  ;;  %v4739_v4 = vld [vmem:[#allocation6 + $0x160] sm:$0xf0] }
 0x14b   :  { %v1192_v28 = vpop.f32.mrf.mxu1  ;;  %v1179_v40 = vadd.f32 %v1178_v16, %v519_v15  ;;  %v4715_v15 = vld [vmem:[#allocation6 + $0xa0] sm:$0xf0]  ;;  %v4057_v16 = vld [vmem:[#allocation6 + $0x240] sm:$0xf] }
 0x14c   :  { %v4058_v19 = vor.u32 %v4768_v17, %v4057_v16  ;;  %v3850_v27 = vor.u32 %v4715_v15, %v3849_v12  ;;  %v3789_v16 = vld [vmem:[#allocation6 + $0x20] sm:$0xf]  ;;  %v4700_v17 = vld [vmem:[#allocation6 + $0x28] sm:$0xf0] }
 0x14d   :  { %v1193_v29 = vadd.f32 %v1192_v28, %v1179_v40  ;;  %v4146_v28 = vor.u32 %v4788_v25, %v4143_v26  ;;  %v3825_v40 = vld [vmem:[#allocation6 + $0x68] sm:$0xf] }
 0x14e   :  { %2100 = vmatpush.bf16.msrb.mxu3 %v4058_v19  ;;  %2142 = vmatpush.bf16.msra.mxu2 %v3966_v24  ;;  %v4736_v19 = vld [vmem:[#allocation6 + $0x148] sm:$0xf0]  ;;  %v4083_v24 = vld [vmem:[#allocation6 + $0x27c] sm:$0xf0] }
 0x150   :  { %v1204_v32 = vpop.f32.mrf.mxu2 }
 0x151   :  { %v1218_v59 = vpop.f32.mrf.mxu3  ;;  %v1205_v46 = vadd.f32 %v1204_v32, %v1191_v39 }
 0x152   :  { %v1232_v41 = vpop.f32.mrf.mxu0  ;;  %2149 = vmatpush.bf16.msra.mxu3 %v4146_v28 }
 0x153   :  { %v1219_v54 = vadd.f32 %v1218_v59, %v1205_v46  ;;  %v1246_v55 = vpop.f32.mrf.mxu1  ;;  %v1233_v13 = vadd.f32 %v1232_v41, %v520_v60  ;;  %v4709_v41 = vld [vmem:[#allocation6 + $0x70] sm:$0xf0] }
 0x155   :  { %v1391_v8 = vmax.f32 %v1219_v54, 0.0  ;;  %v1247_v30 = vadd.f32 %v1246_v55, %v1233_v13  ;;  %v4779_v54 = vld [vmem:[#allocation6 + $0x2a4] sm:$0xf]  ;;  %v4107_v55 = vld [vmem:[#allocation6 + $0x2ac] sm:$0xf0]  ;;  %v3802_v13 = vor.u32 %v4703_v2, %v3801_v63 }
 0x156   :  { %2150 = vmatpush.bf16.msra.mxu3 %v4134_v37  ;;  %v4724_v63 = vld [vmem:[#allocation6 + $0xe8] sm:$0xf0]  ;;  %v4029_v2 = vld [vmem:[#allocation6 + $0x200] sm:$0xf] }
 0x158   :  { %v1206_v50 = vpop.f32.mrf.mxu2 }
 0x159   :  { %v1207_v56 = vadd.f32 %v1206_v50, %v1193_v29  ;;  %v1220_v57 = vpop.f32.mrf.mxu3  ;;  %v3826_v29 = vor.u32 %v4709_v41, %v3825_v40  ;;  %v4706_v50 = vld [vmem:[#allocation6 + $0x58] sm:$0xf0]  ;;  %v3922_v41 = vor.u32 %v4733_v34, %v3921_v33 }
 0x15a   :  { %v1234_v3 = vpop.f32.mrf.mxu0  ;;  %2151 = vmatpush.bf16.msra.mxu3 %v4122_v47  ;;  %v3814_v61 = vor.u32 %v4706_v50, %v3813_v48  ;;  %v4767_v47 = vld [vmem:[#allocation6 + $0x244] sm:$0xf] }
 0x15b   :  { %v1221_v62 = vadd.f32 %v1220_v57, %v1207_v56  ;;  %v1235_v31 = vadd.f32 %v1234_v3, %v520_v60  ;;  %v1248_v32 = vpop.f32.mrf.mxu1  ;;  %v4110_v60 = vor.u32 %v4779_v54, %v4107_v55  ;;  %v3945_v3 = vld [vmem:[#allocation6 + $0x158] sm:$0xf]  ;;  %v4727_v54 = vld [vmem:[#allocation6 + $0x100] sm:$0xf0] }
 0x15c   :  { %v3946_v15 = vor.u32 %v4739_v4, %v3945_v3  ;;  %v4760_v3 = vld [vmem:[#allocation6 + $0x208] sm:$0xf0] }
 0x15d   :  { %v1395_v9 = vmax.f32 %v1221_v62, 0.0  ;;  %v1249_v39 = vadd.f32 %v1248_v32, %v1235_v31  ;;  %v3958_v62 = vor.u32 %v4742_v52, %v3957_v51  ;;  %v4697_v31 = vld [vmem:[#allocation6 + $0x10] sm:$0xf0]  ;;  %v3910_v51 = vor.u32 %v4730_v44, %v3909_v43 }
 0x15e   :  { %2152 = vmatpush.bf16.msra.mxu3 %v4110_v60 }
 0x15f   :  { %v5159_v14 = vpack.c.bf16 %v1395_v9, %v1391_v8  ;;  %v4776_v8 = vld [vmem:[#allocation6 + $0x28c] sm:$0xf]  ;;  %v4095_v9 = vld [vmem:[#allocation6 + $0x294] sm:$0xf0] }
 0x160   :  { %v1260_v18 = vpop.f32.mrf.mxu2  ;;  %v4098_v12 = vor.u32 %v4776_v8, %v4095_v9  ;;  %v4721_v8 = vld [vmem:[#allocation6 + $0xd0] sm:$0xf0]  ;;  %v522_v9 = vperm.slane %v5155_v5, 3  ;;  %v4751_v5 = vld [vmem:[#allocation6 + $0x1c0] sm:$0xf0] }
 0x161   :  { %v1274_v22 = vpop.f32.mrf.mxu3  ;;  %2059 = vmatmul.bf16.vlgmr.msrb.gmra.mxu0 %v5159_v14  ;;  %v1261_v59 = vadd.f32 %v1260_v18, %v1247_v30  ;;  %v3933_v18 = vld [vmem:[#allocation6 + $0x140] sm:$0xf]  ;;  %v3777_v30 = vld [vmem:[#allocation6 + $0x8] sm:$0xf] }
 0x162   :  { %2163 = vmatpush.bf16.msrb.mxu0 %v3862_v11  ;;  %2153 = vmatpush.bf16.msra.mxu3 %v4098_v12  ;;  %v3934_v28 = vor.u32 %v4736_v19, %v3933_v18 }
 0x163   :  { %v1288_v38 = vpop.f32.mrf.mxu0  ;;  %v1275_v23 = vadd.f32 %v1274_v22, %v1261_v59  ;;  %v4773_v22 = vld [vmem:[#allocation6 + $0x274] sm:$0xf]  ;;  %v4071_v59 = vld [vmem:[#allocation6 + $0x264] sm:$0xf0] }
 0x164   :  { %v1289_v6 = vadd.f32 %v1288_v38, %v521_v53  ;;  %v4086_v25 = vor.u32 %v4773_v22, %v4083_v24  ;;  %v3778_v38 = vor.u32 %v4697_v31, %v3777_v30  ;;  %v3981_v31 = vld [vmem:[#allocation6 + $0x1a0] sm:$0xf] }
 0x165   :  { %v1392_v56 = vmax.f32 %v1275_v23, 0.0  ;;  %v4053_v23 = vld [vmem:[#allocation6 + $0x230] sm:$0xf] }
 0x166   :  { %2164 = vmatpush.bf16.msrb.mxu0 %v3850_v27  ;;  %v1302_v57 = vpop.f32.mrf.mxu1  ;;  %v3790_v27 = vor.u32 %v4700_v17, %v3789_v16  ;;  %2154 = vmatpush.bf16.msra.mxu3 %v4086_v25  ;;  %v4005_v16 = vld [vmem:[#allocation6 + $0x1d0] sm:$0xf]  ;;  %v4754_v17 = vld [vmem:[#allocation6 + $0x1d8] sm:$0xf0]  ;;  %v3993_v25 = vld [vmem:[#allocation6 + $0x1b8] sm:$0xf] }
 0x167   :  { %v1303_v20 = vadd.f32 %v1302_v57, %v1289_v6  ;;  %v4763_v57 = vld [vmem:[#allocation6 + $0x220] sm:$0xf0]  ;;  %v4030_v6 = vor.u32 %v4760_v3, %v4029_v2  ;;  %v4237_v3 = vld [vmem:[#allocation7 + $0xa8] sm:$0xf] }
 0x168   :  { %v1262_v42 = vpop.f32.mrf.mxu2 }
 0x169   :  { %v1263_v45 = vadd.f32 %v1262_v42, %v1249_v39  ;;  %v1276_v46 = vpop.f32.mrf.mxu3 }
 0x16a   :  { %2165 = vmatpush.bf16.msrb.mxu0 %v3838_v0  ;;  %v4074_v0 = vor.u32 %v4770_v36, %v4071_v59 }
 0x16b   :  { %v1277_v49 = vadd.f32 %v1276_v46, %v1263_v45  ;;  %v1290_v7 = vpop.f32.mrf.mxu0  ;;  %v4766_v46 = vld [vmem:[#allocation6 + $0x238] sm:$0xf0] }
 0x16c   :  { %v1291_v21 = vadd.f32 %v1290_v7, %v521_v53  ;;  %2155 = vmatpush.bf16.msra.mxu3 %v4074_v0  ;;  %v4054_v52 = vor.u32 %v4766_v46, %v4053_v23  ;;  %v3897_v53 = vld [vmem:[#allocation6 + $0xf8] sm:$0xf]  ;;  %v3873_v7 = vld [vmem:[#allocation6 + $0xc8] sm:$0xf]  ;;  %v4745_v0 = vld [vmem:[#allocation6 + $0x190] sm:$0xf0] }
 0x16d   :  { %v1396_v58 = vmax.f32 %v1277_v49, 0.0  ;;  %v3874_v12 = vor.u32 %v4721_v8, %v3873_v7  ;;  %v4137_v23 = vld [vmem:[#allocation6 + $0x2d8] sm:$0xf]  ;;  %v4225_v7 = vld [vmem:[#allocation7 + $0x90] sm:$0xf] }
 0x16e   :  { %2166 = vmatpush.bf16.msrb.mxu0 %v3826_v29  ;;  %v1304_v32 = vpop.f32.mrf.mxu1  ;;  %v4059_v29 = vld [vmem:[#allocation6 + $0x24c] sm:$0xf0]  ;;  %v4810_v8 = vld [vmem:[#allocation7 + $0x98] sm:$0xf0] }
 0x16f   :  { %v5163_v1 = vpack.c.bf16 %v1396_v58, %v1392_v56  ;;  %v1305_v35 = vadd.f32 %v1304_v32, %v1291_v21  ;;  %v4062_v48 = vor.u32 %v4767_v47, %v4059_v29  ;;  %v4041_v56 = vld [vmem:[#allocation6 + $0x218] sm:$0xf]  ;;  %v3898_v58 = vor.u32 %v4727_v54, %v3897_v53  ;;  %v4748_v32 = vld [vmem:[#allocation6 + $0x1a8] sm:$0xf0]  ;;  %v4125_v47 = vld [vmem:[#allocation6 + $0x2c0] sm:$0xf] }
 0x170   :  { %v1316_v10 = vpop.f32.mrf.mxu2  ;;  %v4006_v21 = vor.u32 %v4754_v17, %v4005_v16  ;;  %v3982_v59 = vor.u32 %v4748_v32, %v3981_v31  ;;  %v4784_v29 = vld [vmem:[#allocation6 + $0x2c8] sm:$0xf0]  ;;  %v4778_v53 = vld [vmem:[#allocation6 + $0x298] sm:$0xf0]  ;;  %v4239_v17 = vld [vmem:[#allocation7 + $0xb4] sm:$0xf0] }
 0x171   :  { %v1330_v11 = vpop.f32.mrf.mxu3  ;;  %2073 = vmatmul.bf16.vlgmr.msrb.gmra.mxu1 %v5163_v1  ;;  %2115 = vmatmul.bf16.vlgmr.msra.gmra.mxu0 %v5159_v14  ;;  %v1317_v26 = vadd.f32 %v1316_v10, %v1303_v20  ;;  %v4757_v10 = vld [vmem:[#allocation6 + $0x1f0] sm:$0xf0]  ;;  %v4812_v16 = vld [vmem:[#allocation7 + $0xac] sm:$0xf]  ;;  %v4165_v32 = vld [vmem:[#allocation7 + $0x18] sm:$0xf] }
 0x172   :  { %2167 = vmatpush.bf16.msrb.mxu0 %v3814_v61  ;;  %2177 = vmatpush.bf16.msrb.mxu1 %v3958_v62  ;;  %v4042_v61 = vor.u32 %v4763_v57, %v4041_v56  ;;  %v3885_v62 = vld [vmem:[#allocation6 + $0xe0] sm:$0xf]  ;;  %v4089_v56 = vld [vmem:[#allocation6 + $0x278] sm:$0xf]  ;;  %v4775_v57 = vld [vmem:[#allocation6 + $0x280] sm:$0xf0] }
 0x173   :  { %v1331_v39 = vadd.f32 %v1330_v11, %v1317_v26  ;;  %2156 = vmatpush.bf16.msra.mxu3 %v4062_v48  ;;  %v3886_v4 = vor.u32 %v4724_v63, %v3885_v62  ;;  %v4126_v48 = vor.u32 %v4784_v29, %v4125_v47  ;;  %v4769_v63 = vld [vmem:[#allocation6 + $0x250] sm:$0xf0]  ;;  %v4834_v47 = vld [vmem:[#allocation7 + $0x158] sm:$0xf0] }
 0x174   :  { %v4797_v29 = vld [vmem:[#allocation7 + $0x34] sm:$0xf] }
 0x175   :  { %v1393_v49 = vmax.f32 %v1331_v39, 0.0  ;;  %v4149_v39 = vld [vmem:[#allocation6 + $0x2f0] sm:$0xf] }
 0x176   :  { %2168 = vmatpush.bf16.msrb.mxu0 %v3802_v13  ;;  %2178 = vmatpush.bf16.msrb.mxu1 %v3946_v15 }
 0x178   :  { %v1318_v37 = vpop.f32.mrf.mxu2 }
 0x179   :  { %v1319_v40 = vadd.f32 %v1318_v37, %v1305_v35  ;;  %v1332_v42 = vpop.f32.mrf.mxu3  ;;  %v3969_v37 = vld [vmem:[#allocation6 + $0x188] sm:$0xf] }
 0x17a   :  { %2169 = vmatpush.bf16.msrb.mxu0 %v3790_v27  ;;  %2179 = vmatpush.bf16.msrb.mxu1 %v3934_v28  ;;  %v3994_v28 = vor.u32 %v4751_v5, %v3993_v25  ;;  %v4177_v5 = vld [vmem:[#allocation7 + $0x30] sm:$0xf] }
 0x17b   :  { %v1333_v45 = vadd.f32 %v1332_v42, %v1319_v40  ;;  %v3970_v42 = vor.u32 %v4745_v0, %v3969_v37  ;;  %v4153_v37 = vld [vmem:[#allocation7] sm:$0xf]  ;;  %v4333_v0 = vld [vmem:[#allocation7 + $0x168] sm:$0xf] }
 0x17d   :  { %v1397_v50 = vmax.f32 %v1333_v45, 0.0  ;;  %v4787_v45 = vld [vmem:[#allocation6 + $0x2e0] sm:$0xf0] }
 0x17e   :  { %2170 = vmatpush.bf16.msrb.mxu0 %v3778_v38  ;;  %2180 = vmatpush.bf16.msrb.mxu1 %v3922_v41  ;;  %v4138_v46 = vor.u32 %v4787_v45, %v4137_v23  ;;  %v4335_v23 = vld [vmem:[#allocation7 + $0x174] sm:$0xf0] }
 0x17f   :  { %v5167_v55 = vpack.c.bf16 %v1397_v50, %v1393_v49  ;;  %v4113_v49 = vld [vmem:[#allocation6 + $0x2a8] sm:$0xf]  ;;  %v4781_v50 = vld [vmem:[#allocation6 + $0x2b0] sm:$0xf0] }
 0x181   :  { %2129 = vmatmul.bf16.vlgmr.msra.gmra.mxu1 %v5163_v1  ;;  %2171 = vmatmul.bf16.vlgmr.msrb.gmra.mxu0 %v5159_v14  ;;  %v4017_v14 = vld [vmem:[#allocation6 + $0x1e8] sm:$0xf] }
 0x182   :  { %2087 = vmatmul.bf16.vlgmr.msrb.gmra.mxu2 %v5167_v55  ;;  %2181 = vmatpush.bf16.msrb.mxu1 %v3910_v51  ;;  %v4018_v13 = vor.u32 %v4757_v10, %v4017_v14  ;;  %v4114_v51 = vor.u32 %v4781_v50, %v4113_v49  ;;  %v4213_v14 = vld [vmem:[#allocation7 + $0x78] sm:$0xf]  ;;  %v4807_v10 = vld [vmem:[#allocation7 + $0x80] sm:$0xf0]  ;;  %v4179_v49 = vld [vmem:[#allocation7 + $0x3c] sm:$0xf0] }
 0x183   :  { %v1344_v60 = vpop.f32.mrf.mxu0  ;;  %2191 = vmatpush.bf16.msrb.mxu2 %v4054_v52  ;;  %v4101_v52 = vld [vmem:[#allocation6 + $0x290] sm:$0xf]  ;;  %v4833_v50 = vld [vmem:[#allocation7 + $0x154] sm:$0xf] }
 0x184   :  { %v1345_v15 = vadd.f32 %v1344_v60, %v522_v9  ;;  %v4102_v54 = vor.u32 %v4778_v53, %v4101_v52  ;;  %v4077_v60 = vld [vmem:[#allocation6 + $0x260] sm:$0xf]  ;;  %v4182_v52 = vor.u32 %v4797_v29, %v4179_v49 }
 0x185   :  { %v4249_v29 = vld [vmem:[#allocation7 + $0xc0] sm:$0xf] }
 0x186   :  { %2182 = vmatpush.bf16.msrb.mxu1 %v3898_v58  ;;  %v1358_v11 = vpop.f32.mrf.mxu1  ;;  %v4090_v58 = vor.u32 %v4775_v57, %v4089_v56  ;;  %v4831_v56 = vld [vmem:[#allocation7 + $0x140] sm:$0xf0]  ;;  %v4794_v57 = vld [vmem:[#allocation7 + $0x1c] sm:$0xf]  ;;  %v4393_v49 = vld [vmem:[#allocation7 + $0x1e0] sm:$0xf] }
 0x187   :  { %2192 = vmatpush.bf16.msrb.mxu2 %v4042_v61  ;;  %v1359_v22 = vadd.f32 %v1358_v11, %v1345_v15  ;;  %v4772_v61 = vld [vmem:[#allocation6 + $0x268] sm:$0xf0]  ;;  %v4214_v11 = vor.u32 %v4807_v10, %v4213_v14 }
 0x188   :  { %v4078_v62 = vor.u32 %v4772_v61, %v4077_v60  ;;  %v4167_v60 = vld [vmem:[#allocation7 + $0x24] sm:$0xf0]  ;;  %v4830_v61 = vld [vmem:[#allocation7 + $0x13c] sm:$0xf] }
 0x18a   :  { %2183 = vmatpush.bf16.msrb.mxu1 %v3886_v4  ;;  %v4813_v4 = vld [vmem:[#allocation7 + $0xb0] sm:$0xf0] }
 0x18b   :  { %2193 = vmatpush.bf16.msrb.mxu2 %v4030_v6  ;;  %v1346_v18 = vpop.f32.mrf.mxu0  ;;  %v4238_v6 = vor.u32 %v4813_v4, %v4237_v3  ;;  %v4828_v3 = vld [vmem:[#allocation7 + $0x128] sm:$0xf0]  ;;  %v4791_v4 = vld [vmem:[#allocation7 + $0x4] sm:$0xf] }
 0x18c   :  { %v1347_v24 = vadd.f32 %v1346_v18, %v522_v9  ;;  %v4226_v9 = vor.u32 %v4810_v8, %v4225_v7  ;;  %v4242_v18 = vor.u32 %v4812_v16, %v4239_v17  ;;  %v4155_v7 = vld [vmem:[#allocation7 + $0xc] sm:$0xf0]  ;;  %v4827_v8 = vld [vmem:[#allocation7 + $0x124] sm:$0xf]  ;;  %v4825_v16 = vld [vmem:[#allocation7 + $0x110] sm:$0xf0] }
 0x18d   :  { %2716 = vmatpush.bf16.msra.mxu0 %v4238_v6  ;;  %v4158_v14 = vor.u32 %v4791_v4, %v4155_v7  ;;  %v4429_v17 = vld [vmem:[#allocation7 + $0x228] sm:$0xf]  ;;  %v4849_v4 = vld [vmem:[#allocation7 + $0x1d0] sm:$0xf0] }
 0x18e   :  { %2184 = vmatpush.bf16.msrb.mxu1 %v3874_v12  ;;  %v1360_v27 = vpop.f32.mrf.mxu1  ;;  %v4201_v12 = vld [vmem:[#allocation7 + $0x60] sm:$0xf] }
 0x18f   :  { %2194 = vmatpush.bf16.msrb.mxu2 %v4018_v13  ;;  %v1361_v30 = vadd.f32 %v1360_v27, %v1347_v24  ;;  %v4804_v13 = vld [vmem:[#allocation7 + $0x68] sm:$0xf0]  ;;  %v4227_v24 = vld [vmem:[#allocation7 + $0x9c] sm:$0xf0]  ;;  %v4806_v27 = vld [vmem:[#allocation7 + $0x7c] sm:$0xf] }
 0x190   :  { %v1372_v19 = vpop.f32.mrf.mxu2  ;;  %v4202_v15 = vor.u32 %v4804_v13, %v4201_v12  ;;  %v4838_v12 = vld [vmem:[#allocation7 + $0x178] sm:$0xf0] }
 0x191   :  { %v1386_v20 = vpop.f32.mrf.mxu3  ;;  %2185 = vmatmul.bf16.vlgmr.msrb.gmra.mxu1 %v5163_v1  ;;  %v1373_v26 = vadd.f32 %v1372_v19, %v1359_v22  ;;  %v4790_v1 = vld [vmem:[#allocation6 + $0x2f8] sm:$0xf0]  ;;  %2717 = vmatpush.bf16.msra.mxu0 %v4226_v9  ;;  %v4189_v19 = vld [vmem:[#allocation7 + $0x48] sm:$0xf]  ;;  %v4809_v22 = vld [vmem:[#allocation7 + $0x94] sm:$0xf] }
 0x192   :  { %2143 = vmatmul.bf16.vlgmr.msra.gmra.mxu2 %v5167_v55  ;;  %v4150_v43 = vor.u32 %v4790_v1, %v4149_v39  ;;  %v4230_v25 = vor.u32 %v4809_v22, %v4227_v24  ;;  %v4837_v1 = vld [vmem:[#allocation7 + $0x170] sm:$0xf0]  ;;  %v4299_v9 = vld [vmem:[#allocation7 + $0x12c] sm:$0xf0] }
 0x193   :  { %2195 = vmatpush.bf16.msrb.mxu2 %v4006_v21  ;;  %v1387_v34 = vadd.f32 %v1386_v20, %v1373_v26  ;;  %v4801_v20 = vld [vmem:[#allocation7 + $0x50] sm:$0xf0]  ;;  %v4798_v26 = vld [vmem:[#allocation7 + $0x38] sm:$0xf0]  ;;  %v4302_v10 = vor.u32 %v4827_v8, %v4299_v9  ;;  %v4419_v9 = vld [vmem:[#allocation7 + $0x21c] sm:$0xf0] }
 0x194   :  { %v4190_v21 = vor.u32 %v4801_v20, %v4189_v19  ;;  %v4861_v19 = vld [vmem:[#allocation7 + $0x230] sm:$0xf0]  ;;  %v4824_v20 = vld [vmem:[#allocation7 + $0x10c] sm:$0xf] }
 0x195   :  { %v1394_v40 = vmax.f32 %v1387_v34, 0.0  ;;  %2718 = vmatpush.bf16.msra.mxu0 %v4214_v11  ;;  %v4341_v11 = vld [vmem:[#allocation7 + $0x170] sm:$0xf]  ;;  %v4430_v22 = vor.u32 %v4861_v19, %v4429_v17  ;;  %v4857_v8 = vld [vmem:[#allocation7 + $0x214] sm:$0xf] }
 0x196   :  { %v4342_v13 = vor.u32 %v4838_v12, %v4341_v11  ;;  %v4823_v11 = vld [vmem:[#allocation7 + $0x100] sm:$0xf0]  ;;  %v4854_v17 = vld [vmem:[#allocation7 + $0x1fc] sm:$0xf]  ;;  %v4269_v19 = vld [vmem:[#allocation7 + $0xe0] sm:$0xf] }
 0x197   :  { %2196 = vmatpush.bf16.msrb.mxu2 %v3994_v28  ;;  %v4178_v28 = vor.u32 %v4798_v26, %v4177_v5  ;;  %v4835_v5 = vld [vmem:[#allocation7 + $0x160] sm:$0xf0] }
 0x198   :  { %v1374_v33 = vpop.f32.mrf.mxu2 }
 0x199   :  { %v1375_v35 = vadd.f32 %v1374_v33, %v1361_v30  ;;  %v1388_v36 = vpop.f32.mrf.mxu3  ;;  %2719 = vmatpush.bf16.msra.mxu0 %v4202_v15  ;;  %v4215_v30 = vld [vmem:[#allocation7 + $0x84] sm:$0xf0]  ;;  %v4795_v33 = vld [vmem:[#allocation7 + $0x20] sm:$0xf0] }
 0x19a   :  { %v4218_v31 = vor.u32 %v4806_v27, %v4215_v30  ;;  %v4166_v34 = vor.u32 %v4795_v33, %v4165_v32  ;;  %v4285_v15 = vld [vmem:[#allocation7 + $0x108] sm:$0xf]  ;;  %v4273_v27 = vld [vmem:[#allocation7 + $0xf0] sm:$0xf]  ;;  %v4858_v32 = vld [vmem:[#allocation7 + $0x218] sm:$0xf0] }
 0x19b   :  { %v1389_v38 = vadd.f32 %v1388_v36, %v1375_v35  ;;  %2197 = vmatpush.bf16.msrb.mxu2 %v3982_v59  ;;  %v4803_v35 = vld [vmem:[#allocation7 + $0x64] sm:$0xf]  ;;  %v4203_v36 = vld [vmem:[#allocation7 + $0x6c] sm:$0xf0]  ;;  %v4821_v33 = vld [vmem:[#allocation7 + $0xf4] sm:$0xf] }
 0x19c   :  { %v4206_v59 = vor.u32 %v4803_v35, %v4203_v36  ;;  %v4417_v30 = vld [vmem:[#allocation7 + $0x210] sm:$0xf] }
 0x19d   :  { %v1398_v41 = vmax.f32 %v1389_v38, 0.0  ;;  %2720 = vmatpush.bf16.msra.mxu0 %v4190_v21  ;;  %v4792_v38 = vld [vmem:[#allocation7 + $0x8] sm:$0xf0]  ;;  %v4287_v21 = vld [vmem:[#allocation7 + $0x114] sm:$0xf0]  ;;  %v4418_v35 = vor.u32 %v4858_v32, %v4417_v30 }
 0x19e   :  { %v4154_v39 = vor.u32 %v4792_v38, %v4153_v37  ;;  %v4290_v24 = vor.u32 %v4824_v20, %v4287_v21  ;;  %v4832_v37 = vld [vmem:[#allocation7 + $0x148] sm:$0xf0]  ;;  %v4851_v30 = vld [vmem:[#allocation7 + $0x1e4] sm:$0xf]  ;;  %v4257_v32 = vld [vmem:[#allocation7 + $0xc8] sm:$0xf] }
 0x19f   :  { %v1402_v44 = vpack.c.bf16 %v1398_v41, %v1394_v40  ;;  %2198 = vmatpush.bf16.msrb.mxu2 %v3970_v42  ;;  %v4800_v40 = vld [vmem:[#allocation7 + $0x4c] sm:$0xf]  ;;  %v4191_v41 = vld [vmem:[#allocation7 + $0x54] sm:$0xf0]  ;;  %v4334_v42 = vor.u32 %v4837_v1, %v4333_v0 }
 0x1a0   :  { %v4261_v0 = vld [vmem:[#allocation7 + $0xd8] sm:$0xf]  ;;  %v4820_v21 = vld [vmem:[#allocation7 + $0xe8] sm:$0xf0] }
 0x1a1   :  { %2101 = vmatmul.bf16.vlgmr.msrb.gmra.mxu3 %v1402_v44  ;;  %2721 = vmatpush.bf16.msra.mxu0 %v4178_v28  ;;  %v4822_v28 = vld [vmem:[#allocation7 + $0xf8] sm:$0xf0]  ;;  %v4405_v1 = vld [vmem:[#allocation7 + $0x1f8] sm:$0xf] }
 0x1a2   :  { %2205 = vmatpush.bf16.msrb.mxu3 %v4150_v43  ;;  %2199 = vmatmul.bf16.vlgmr.msrb.gmra.mxu2 %v5167_v55  ;;  %v4065_v55 = vld [vmem:[#allocation6 + $0x248] sm:$0xf]  ;;  %v4194_v43 = vor.u32 %v4800_v40, %v4191_v41  ;;  %v4855_v41 = vld [vmem:[#allocation7 + $0x200] sm:$0xf0] }
 0x1a3   :  { %v4066_v2 = vor.u32 %v4769_v63, %v4065_v55  ;;  %2730 = vmatpush.bf16.msra.mxu1 %v4334_v42  ;;  %v4170_v55 = vor.u32 %v4794_v57, %v4167_v60  ;;  %2744 = vmatpush.bf16.msra.mxu2 %v4430_v22  ;;  %v4818_v42 = vld [vmem:[#allocation7 + $0xdc] sm:$0xf]  ;;  %v4431_v60 = vld [vmem:[#allocation7 + $0x234] sm:$0xf0] }
 0x1a5   :  { %2722 = vmatpush.bf16.msra.mxu0 %v4166_v34  ;;  %v4275_v34 = vld [vmem:[#allocation7 + $0xfc] sm:$0xf0] }
 0x1a6   :  { %2206 = vmatpush.bf16.msrb.mxu3 %v4138_v46  ;;  %v4321_v46 = vld [vmem:[#allocation7 + $0x150] sm:$0xf]  ;;  %v4278_v36 = vor.u32 %v4821_v33, %v4275_v34  ;;  %v4817_v34 = vld [vmem:[#allocation7 + $0xd0] sm:$0xf0] }
 0x1a7   :  { %2745 = vmatpush.bf16.msra.mxu2 %v4418_v35 }
 0x1a9   :  { %2723 = vmatpush.bf16.msra.mxu0 %v4154_v39  ;;  %v4819_v39 = vld [vmem:[#allocation7 + $0xe0] sm:$0xf0] }
 0x1aa   :  { %2207 = vmatpush.bf16.msrb.mxu3 %v4126_v48  ;;  %v4322_v48 = vor.u32 %v4834_v47, %v4321_v46  ;;  %v4262_v40 = vor.u32 %v4819_v39, %v4261_v0  ;;  %v4829_v46 = vld [vmem:[#allocation7 + $0x130] sm:$0xf0]  ;;  %v4848_v39 = vld [vmem:[#allocation7 + $0x1cc] sm:$0xf] }
 0x1ac   :  { %2731 = vmatpush.bf16.msra.mxu1 %v4322_v48  ;;  %v4816_v48 = vld [vmem:[#allocation7 + $0xc8] sm:$0xf0] }
 0x1ae   :  { %2208 = vmatpush.bf16.msrb.mxu3 %v4114_v51  ;;  %v4323_v51 = vld [vmem:[#allocation7 + $0x15c] sm:$0xf0] }
 0x1af   :  { %v4326_v53 = vor.u32 %v4833_v50, %v4323_v51  ;;  %v4250_v51 = vor.u32 %v4816_v48, %v4249_v29  ;;  %v4233_v29 = vld [vmem:[#allocation7 + $0x98] sm:$0xf] }
 0x1b1   :  { %2157 = vmatmul.bf16.vlgmr.msra.gmra.mxu3 %v1402_v44 }
 0x1b2   :  { %2209 = vmatpush.bf16.msrb.mxu3 %v4102_v54  ;;  %v4309_v54 = vld [vmem:[#allocation7 + $0x138] sm:$0xf] }
 0x1b6   :  { %2210 = vmatpush.bf16.msrb.mxu3 %v4090_v58  ;;  %v4310_v58 = vor.u32 %v4831_v56, %v4309_v54  ;;  %v4251_v54 = vld [vmem:[#allocation7 + $0xcc] sm:$0xf0] }
 0x1b8   :  { %2732 = vmatpush.bf16.msra.mxu1 %v4310_v58  ;;  %v4860_v58 = vld [vmem:[#allocation7 + $0x22c] sm:$0xf] }
 0x1ba   :  { %2211 = vmatpush.bf16.msrb.mxu3 %v4078_v62  ;;  %v4311_v62 = vld [vmem:[#allocation7 + $0x144] sm:$0xf0] }
 0x1bb   :  { %v4314_v63 = vor.u32 %v4830_v61, %v4311_v62  ;;  %v4293_v61 = vld [vmem:[#allocation7 + $0x110] sm:$0xf] }
 0x1be   :  { %2212 = vmatpush.bf16.msrb.mxu3 %v4066_v2  ;;  %v4297_v2 = vld [vmem:[#allocation7 + $0x120] sm:$0xf] }
 0x1bf   :  { %v4298_v6 = vor.u32 %v4828_v3, %v4297_v2  ;;  %v4381_v3 = vld [vmem:[#allocation7 + $0x1c8] sm:$0xf] }
 0x1c0   :  { %v4382_v7 = vor.u32 %v4849_v4, %v4381_v3  ;;  %v4808_v3 = vld [vmem:[#allocation7 + $0x88] sm:$0xf0] }
 0x1c1   :  { %2213 = vmatmul.bf16.vlgmr.msrb.gmra.mxu3 %v1402_v44  ;;  %v4836_v44 = vld [vmem:[#allocation7 + $0x16c] sm:$0xf]  ;;  %2733 = vmatpush.bf16.msra.mxu1 %v4298_v6 }
 0x1c2   :  { %2758 = vmatpush.bf16.msra.mxu3 %v4242_v18  ;;  %v4338_v45 = vor.u32 %v4836_v44, %v4335_v23  ;;  %v4286_v18 = vor.u32 %v4825_v16, %v4285_v15  ;;  %v4406_v44 = vor.u32 %v4855_v41, %v4405_v1  ;;  %v4846_v15 = vld [vmem:[#allocation7 + $0x1b8] sm:$0xf0]  ;;  %v4383_v1 = vld [vmem:[#allocation7 + $0x1d4] sm:$0xf0] }
 0x1c3   :  { %v4386_v41 = vor.u32 %v4848_v39, %v4383_v1  ;;  %v4796_v39 = vld [vmem:[#allocation7 + $0x28] sm:$0xf0] }
 0x1c4   :  { %2772 = vmatpush.bf16.msrb.mxu0 %v4338_v45  ;;  %v4305_v45 = vld [vmem:[#allocation7 + $0x128] sm:$0xf]  ;;  %2746 = vmatpush.bf16.msra.mxu2 %v4406_v44 }
 0x1c5   :  { %2734 = vmatpush.bf16.msra.mxu1 %v4286_v18  ;;  %v4306_v47 = vor.u32 %v4829_v46, %v4305_v45  ;;  %v4407_v18 = vld [vmem:[#allocation7 + $0x204] sm:$0xf0]  ;;  %v4845_v46 = vld [vmem:[#allocation7 + $0x1b4] sm:$0xf] }
 0x1c6   :  { %2759 = vmatpush.bf16.msra.mxu3 %v4230_v25  ;;  %v4329_v25 = vld [vmem:[#allocation7 + $0x158] sm:$0xf]  ;;  %v4410_v20 = vor.u32 %v4854_v17, %v4407_v18 }
 0x1c7   :  { %v4330_v26 = vor.u32 %v4835_v5, %v4329_v25  ;;  %v5185_v25 = vld [vmem:[%s5216_s6] sm:$0x7]  ;;  %v4357_v5 = vld [vmem:[#allocation7 + $0x198] sm:$0xf] }
 0x1c8   :  { %2773 = vmatpush.bf16.msrb.mxu0 %v4326_v53  ;;  %v4815_v53 = vld [vmem:[#allocation7 + $0xc4] sm:$0xf] }
 0x1c9   :  { %v4254_v57 = vor.u32 %v4815_v53, %v4251_v54 }
 0x1ca   :  { %2760 = vmatpush.bf16.msra.mxu3 %v4218_v31  ;;  %v4274_v31 = vor.u32 %v4822_v28, %v4273_v27 }
 0x1cc   :  { %2774 = vmatpush.bf16.msrb.mxu0 %v4314_v63  ;;  %2735 = vmatpush.bf16.msra.mxu1 %v4274_v31  ;;  %v4826_v63 = vld [vmem:[#allocation7 + $0x118] sm:$0xf0]  ;;  %v4395_v31 = vld [vmem:[#allocation7 + $0x1ec] sm:$0xf0] }
 0x1cd   :  { %v4294_v2 = vor.u32 %v4826_v63, %v4293_v61  ;;  %v4398_v33 = vor.u32 %v4851_v30, %v4395_v31  ;;  %v4221_v61 = vld [vmem:[#allocation7 + $0x80] sm:$0xf] }
 0x1ce   :  { %2761 = vmatpush.bf16.msra.mxu3 %v4206_v59  ;;  %v4317_v59 = vld [vmem:[#allocation7 + $0x140] sm:$0xf] }
 0x1cf   :  { %v4318_v38 = vor.u32 %v4832_v37, %v4317_v59  ;;  %v1533_v59 = vperm.slane %v5185_v25, 0  ;;  %v4345_v37 = vld [vmem:[#allocation7 + $0x180] sm:$0xf] }
 0x1d0   :  { %2775 = vmatpush.bf16.msrb.mxu0 %v4302_v10  ;;  %2736 = vmatpush.bf16.msra.mxu1 %v4262_v40  ;;  %v4422_v10 = vor.u32 %v4857_v8, %v4419_v9  ;;  %v4245_v40 = vld [vmem:[#allocation7 + $0xb0] sm:$0xf]  ;;  %v4862_v9 = vld [vmem:[#allocation7 + $0x238] sm:$0xf0] }
 0x1d1   :  { %v4437_v8 = vld [vmem:[#allocation7 + $0x230] sm:$0xf] }
 0x1d2   :  { %2762 = vmatpush.bf16.msra.mxu3 %v4194_v43  ;;  %v4263_v43 = vld [vmem:[#allocation7 + $0xe4] sm:$0xf0]  ;;  %v4438_v17 = vor.u32 %v4862_v9, %v4437_v8  ;;  %v4365_v8 = vld [vmem:[#allocation7 + $0x1a0] sm:$0xf]  ;;  %v4844_v9 = vld [vmem:[#allocation7 + $0x1a8] sm:$0xf0] }
 0x1d3   :  { %v4266_v23 = vor.u32 %v4818_v42, %v4263_v43  ;;  %v4814_v42 = vld [vmem:[#allocation7 + $0xb8] sm:$0xf0] }
 0x1d4   :  { %2776 = vmatpush.bf16.msrb.mxu0 %v4290_v24  ;;  %2737 = vmatpush.bf16.msra.mxu1 %v4250_v51  ;;  %v4270_v24 = vor.u32 %v4820_v21, %v4269_v19  ;;  %v4246_v44 = vor.u32 %v4814_v42, %v4245_v40  ;;  %v1534_v19 = vperm.slane %v5185_v25, 1  ;;  %v4425_v21 = vld [vmem:[#allocation7 + $0x218] sm:$0xf]  ;;  %v4401_v42 = vld [vmem:[#allocation7 + $0x1e8] sm:$0xf] }
 0x1d6   :  { %2763 = vmatpush.bf16.msra.mxu3 %v4182_v52  ;;  %v4852_v52 = vld [vmem:[#allocation7 + $0x1e8] sm:$0xf0] }
 0x1d7   :  { %v4394_v56 = vor.u32 %v4852_v52, %v4393_v49  ;;  %v4811_v52 = vld [vmem:[#allocation7 + $0xa0] sm:$0xf0] }
 0x1d8   :  { %2777 = vmatpush.bf16.msrb.mxu0 %v4278_v36  ;;  %v4258_v36 = vor.u32 %v4817_v34, %v4257_v32  ;;  %v4234_v54 = vor.u32 %v4811_v52, %v4233_v29  ;;  %v4185_v32 = vld [vmem:[#allocation7 + $0x38] sm:$0xf]  ;;  %v4793_v29 = vld [vmem:[#allocation7 + $0x10] sm:$0xf0] }
 0x1d9   :  { %2747 = vmatpush.bf16.msra.mxu2 %v4394_v56 }
 0x1da   :  { %2764 = vmatpush.bf16.msra.mxu3 %v4170_v55  ;;  %v4434_v55 = vor.u32 %v4860_v58, %v4431_v60  ;;  %v4359_v60 = vld [vmem:[#allocation7 + $0x1a4] sm:$0xf0] }
 0x1dc   :  { %2778 = vmatpush.bf16.msrb.mxu0 %v4266_v23  ;;  %2786 = vmatpush.bf16.msrb.mxu1 %v4434_v55 }
 0x1dd   :  { %2748 = vmatpush.bf16.msra.mxu2 %v4382_v7  ;;  %v4222_v7 = vor.u32 %v4808_v3, %v4221_v61  ;;  %v1535_v61 = vperm.slane %v5185_v25, 2  ;;  %v4366_v25 = vor.u32 %v4844_v9, %v4365_v8 }
 0x1de   :  { %2765 = vmatpush.bf16.msra.mxu3 %v4158_v14  ;;  %v5176_v50 = vpop.f32.mrf.mxu0  ;;  %v4281_v14 = vld [vmem:[#allocation7 + $0xf8] sm:$0xf] }
 0x1df   :  { %v4282_v12 = vor.u32 %v4823_v11, %v4281_v14  ;;  %v2061_v23 = vadd.f32 %v5176_v50, %v1533_v59  ;;  %v4842_v50 = vld [vmem:[#allocation7 + $0x19c] sm:$0xf]  ;;  %v4839_v14 = vld [vmem:[#allocation7 + $0x184] sm:$0xf] }
 0x1e0   :  { %2779 = vmatpush.bf16.msrb.mxu0 %v4254_v57  ;;  %2787 = vmatpush.bf16.msrb.mxu1 %v4422_v10  ;;  %v4347_v10 = vld [vmem:[#allocation7 + $0x18c] sm:$0xf0] }
 0x1e2   :  { %2814 = vmatpush.bf16.msrb.mxu3 %v4342_v13  ;;  %v4369_v13 = vld [vmem:[#allocation7 + $0x1b0] sm:$0xf] }
 0x1e3   :  { %v4370_v16 = vor.u32 %v4846_v15, %v4369_v13  ;;  %v4350_v13 = vor.u32 %v4839_v14, %v4347_v10  ;;  %v4805_v15 = vld [vmem:[#allocation7 + $0x70] sm:$0xf0] }
 0x1e4   :  { %2788 = vmatpush.bf16.msrb.mxu1 %v4410_v20 }
 0x1e5   :  { %2749 = vmatpush.bf16.msra.mxu2 %v4370_v16 }
 0x1e6   :  { %2815 = vmatpush.bf16.msrb.mxu3 %v4330_v26  ;;  %v2062_v22 = vpop.f32.mrf.mxu0  ;;  %v4843_v26 = vld [vmem:[#allocation7 + $0x1a0] sm:$0xf0] }
 0x1e7   :  { %v4358_v28 = vor.u32 %v4843_v26, %v4357_v5  ;;  %v2063_v48 = vadd.f32 %v2062_v22, %v1533_v59  ;;  %v4859_v22 = vld [vmem:[#allocation7 + $0x220] sm:$0xf0]  ;;  %v4197_v5 = vld [vmem:[#allocation7 + $0x50] sm:$0xf]  ;;  %v4802_v26 = vld [vmem:[#allocation7 + $0x58] sm:$0xf0] }
 0x1e8   :  { %2789 = vmatpush.bf16.msrb.mxu1 %v4398_v33  ;;  %v4426_v31 = vor.u32 %v4859_v22, %v4425_v21  ;;  %v4799_v33 = vld [vmem:[#allocation7 + $0x40] sm:$0xf0] }
 0x1e9   :  { %2750 = vmatpush.bf16.msra.mxu2 %v4358_v28  ;;  %v4186_v59 = vor.u32 %v4799_v33, %v4185_v32  ;;  %v4869_v32 = vld [vmem:[#allocation9 + $0x30] sm:$0xff]  ;;  %v4875_v33 = vld [vmem:[#allocation9 + $0x60] sm:$0xff] }
 0x1ea   :  { %2816 = vmatpush.bf16.msrb.mxu3 %v4318_v38  ;;  %v4840_v38 = vld [vmem:[#allocation7 + $0x188] sm:$0xf0] }
 0x1eb   :  { %v4346_v0 = vor.u32 %v4840_v38, %v4345_v37 }
 0x1ec   :  { %2790 = vmatpush.bf16.msrb.mxu1 %v4386_v41 }
 0x1ed   :  { %2751 = vmatpush.bf16.msra.mxu2 %v4346_v0  ;;  %v4173_v0 = vld [vmem:[#allocation7 + $0x20] sm:$0xf] }
 0x1ee   :  { %2817 = vmatpush.bf16.msrb.mxu3 %v4306_v47  ;;  %v5178_v62 = vpop.f32.mrf.mxu1  ;;  %v2116_v45 = vpop.f32.mrf.mxu0  ;;  %v4371_v47 = vld [vmem:[#allocation7 + $0x1bc] sm:$0xf0] }
 0x1ef   :  { %v2075_v49 = vadd.f32 %v5178_v62, %v2061_v23  ;;  %v4374_v51 = vor.u32 %v4845_v46, %v4371_v47  ;;  %v2117_v34 = vadd.f32 %v2116_v45, %v1534_v19  ;;  %v4174_v23 = vor.u32 %v4796_v39, %v4173_v0  ;;  %v4161_v45 = vld [vmem:[#allocation7 + $0x8] sm:$0xf]  ;;  %v4865_v0 = vld [vmem:[#allocation9 + $0x10] sm:$0xff]  ;;  %v4886_v39 = vld [vmem:[#allocation9 + $0xb8] sm:$0xff] }
 0x1f1   :  { %2800 = vmatpush.bf16.msrb.mxu2 %v4246_v44  ;;  %2791 = vmatpush.bf16.msrb.mxu1 %v4374_v51 }
 0x1f2   :  { %2818 = vmatpush.bf16.msrb.mxu3 %v4294_v2  ;;  %v4362_v2 = vor.u32 %v4842_v50, %v4359_v60 }
 0x1f5   :  { %2801 = vmatpush.bf16.msrb.mxu2 %v4234_v54  ;;  %2792 = vmatpush.bf16.msrb.mxu1 %v4362_v2  ;;  %v4850_v54 = vld [vmem:[#allocation7 + $0x1d8] sm:$0xf0]  ;;  %v4847_v2 = vld [vmem:[#allocation7 + $0x1c0] sm:$0xf0] }
 0x1f6   :  { %2819 = vmatpush.bf16.msrb.mxu3 %v4282_v12  ;;  %v2076_v27 = vpop.f32.mrf.mxu1  ;;  %v2118_v16 = vpop.f32.mrf.mxu0 }
 0x1f7   :  { %v2077_v56 = vadd.f32 %v2076_v27, %v2063_v48  ;;  %v4198_v27 = vor.u32 %v4802_v26, %v4197_v5  ;;  %v2119_v37 = vadd.f32 %v2118_v16, %v1534_v19  ;;  %v4841_v16 = vld [vmem:[#allocation7 + $0x190] sm:$0xf0] }
 0x1f9   :  { %2802 = vmatpush.bf16.msrb.mxu2 %v4222_v7  ;;  %2793 = vmatpush.bf16.msrb.mxu1 %v4350_v13 }
 0x1fa   :  { %2820 = vmatpush.bf16.msrb.mxu3 %v4270_v24 }
 0x1fe   :  { %2821 = vmatpush.bf16.msrb.mxu3 %v4258_v36  ;;  %v2130_v53 = vpop.f32.mrf.mxu1  ;;  %v4856_v36 = vld [vmem:[#allocation7 + $0x208] sm:$0xf0]  ;;  %v2172_v44 = vpop.f32.mrf.mxu0 }
 0x1ff   :  { %v2131_v38 = vadd.f32 %v2130_v53, %v2117_v34  ;;  %v4389_v53 = vld [vmem:[#allocation7 + $0x1d0] sm:$0xf]  ;;  %v4868_v34 = vld [vmem:[#allocation9 + $0x28] sm:$0xff] }
 0x200   :  { %v4390_v60 = vor.u32 %v4850_v54, %v4389_v53  ;;  %v4880_v54 = vld [vmem:[#allocation9 + $0x88] sm:$0xff] }
 0x205   :  { %v5180_v6 = vpop.f32.mrf.mxu2 }
 0x206   :  { %v2089_v57 = vadd.f32 %v5180_v6, %v2075_v49  ;;  %v4209_v6 = vld [vmem:[#allocation7 + $0x68] sm:$0xf]  ;;  %v2132_v24 = vpop.f32.mrf.mxu1  ;;  %v2174_v3 = vpop.f32.mrf.mxu0 }
 0x207   :  { %v4210_v18 = vor.u32 %v4805_v15, %v4209_v6  ;;  %v2133_v40 = vadd.f32 %v2132_v24, %v2119_v37  ;;  %v2175_v10 = vadd.f32 %v2174_v3, %v1535_v61  ;;  %v4353_v15 = vld [vmem:[#allocation7 + $0x188] sm:$0xf] }
 0x208   :  { %v4354_v21 = vor.u32 %v4841_v16, %v4353_v15 }
 0x209   :  { %2803 = vmatpush.bf16.msrb.mxu2 %v4210_v18 }
 0x20d   :  { %v2090_v35 = vpop.f32.mrf.mxu2  ;;  %2804 = vmatpush.bf16.msrb.mxu2 %v4198_v27  ;;  %v4878_v27 = vld [vmem:[#allocation9 + $0x78] sm:$0xff] }
 0x20e   :  { %v2091_v55 = vadd.f32 %v2090_v35, %v2077_v56  ;;  %v4413_v35 = vld [vmem:[#allocation7 + $0x200] sm:$0xf]  ;;  %v2186_v48 = vpop.f32.mrf.mxu1 }
 0x20f   :  { %v4414_v1 = vor.u32 %v4856_v36, %v4413_v35  ;;  %v4874_v35 = vld [vmem:[#allocation9 + $0x58] sm:$0xff]  ;;  %v4867_v36 = vld [vmem:[#allocation9 + $0x20] sm:$0xff] }
 0x211   :  { %2805 = vmatpush.bf16.msrb.mxu2 %v4186_v59  ;;  %v4873_v59 = vld [vmem:[#allocation9 + $0x50] sm:$0xff] }
 0x215   :  { %v2144_v58 = vpop.f32.mrf.mxu2  ;;  %2806 = vmatpush.bf16.msrb.mxu2 %v4174_v23  ;;  %v4884_v23 = vld [vmem:[#allocation9 + $0xa8] sm:$0xff] }
 0x216   :  { %v2145_v41 = vadd.f32 %v2144_v58, %v2131_v38  ;;  %v2188_v14 = vpop.f32.mrf.mxu1  ;;  %v4872_v38 = vld [vmem:[#allocation9 + $0x48] sm:$0xff] }
 0x21d   :  { %v2146_v28 = vpop.f32.mrf.mxu2 }
 0x21e   :  { %v2147_v46 = vadd.f32 %v2146_v28, %v2133_v40  ;;  %v4877_v28 = vld [vmem:[#allocation9 + $0x70] sm:$0xff]  ;;  %v4864_v40 = vld [vmem:[#allocation9 + $0x8] sm:$0xff] }
 0x224   :  { %v2102_v43 = vpop.f32.mrf.mxu3 }
 0x225   :  { %v2103_v63 = vadd.f32 %v2102_v43, %v2089_v57  ;;  %v4853_v43 = vld [vmem:[#allocation7 + $0x1f0] sm:$0xf0]  ;;  %v2200_v56 = vpop.f32.mrf.mxu2  ;;  %v4162_v57 = vor.u32 %v4793_v29, %v4161_v45  ;;  %v4882_v29 = vld [vmem:[#allocation9 + $0x98] sm:$0xff] }
 0x226   :  { %v4402_v51 = vor.u32 %v4853_v43, %v4401_v42 }
 0x227   :  { %v2219_v11 = vmax.f32 %v2103_v63, 0.0  ;;  %v4377_v63 = vld [vmem:[#allocation7 + $0x1b8] sm:$0xf]  ;;  %2807 = vmatpush.bf16.msrb.mxu2 %v4162_v57 }
 0x228   :  { %v4378_v7 = vor.u32 %v4847_v2, %v4377_v63 }
 0x22c   :  { %v2104_v4 = vpop.f32.mrf.mxu3 }
 0x22d   :  { %v2105_v62 = vadd.f32 %v2104_v4, %v2091_v55 }
 0x22f   :  { %v2222_v12 = vmax.f32 %v2105_v62, 0.0  ;;  %v2173_v62 = vadd.f32 %v2172_v44, %v1535_v61  ;;  %v4863_v44 = vld [vmem:[#allocation9] sm:$0xff] }
 0x231   :  { %v5192_v20 = vpack.c.bf16 %v2222_v12, %v2219_v11  ;;  %v2187_v6 = vadd.f32 %v2186_v48, %v2173_v62  ;;  %v2202_v11 = vpop.f32.mrf.mxu2  ;;  %v2189_v12 = vadd.f32 %v2188_v14, %v2175_v10 }
 0x233   :  { %2724 = vmatmul.bf16.vlgmr.msra.gmra.mxu0 %v5192_v20  ;;  %2766 = vmatmul.bf16.vlgmr.msra.gmra.mxu3 %v5192_v20  ;;  %v2201_v13 = vadd.f32 %v2200_v56, %v2187_v6 }
 0x234   :  { %v2158_v30 = vpop.f32.mrf.mxu3  ;;  %2828 = vmatpush.bf16.msra.mxu0 %v4438_v17  ;;  %v2203_v17 = vadd.f32 %v2202_v11, %v2189_v12  ;;  %3075 = vmatpush.bf16.msra.mxu3 %v4886_v39 }
 0x235   :  { %v2159_v47 = vadd.f32 %v2158_v30, %v2145_v41  ;;  %v4870_v30 = vld [vmem:[#allocation9 + $0x38] sm:$0xff]  ;;  %v4885_v41 = vld [vmem:[#allocation9 + $0xb0] sm:$0xff] }
 0x237   :  { %v2220_v58 = vmax.f32 %v2159_v47, 0.0 }
 0x238   :  { %2829 = vmatpush.bf16.msra.mxu0 %v4426_v31  ;;  %v4876_v31 = vld [vmem:[#allocation9 + $0x68] sm:$0xff]  ;;  %3076 = vmatpush.bf16.msra.mxu3 %v4885_v41 }
 0x23c   :  { %v2160_v49 = vpop.f32.mrf.mxu3  ;;  %2830 = vmatpush.bf16.msra.mxu0 %v4414_v1  ;;  %v4871_v1 = vld [vmem:[#allocation9 + $0x40] sm:$0xff]  ;;  %3077 = vmatpush.bf16.msra.mxu3 %v4884_v23 }
 0x23d   :  { %v2161_v52 = vadd.f32 %v2160_v49, %v2147_v46  ;;  %v4883_v46 = vld [vmem:[#allocation9 + $0xa0] sm:$0xff]  ;;  %v4881_v49 = vld [vmem:[#allocation9 + $0x90] sm:$0xff] }
 0x23f   :  { %v2223_v50 = vmax.f32 %v2161_v52, 0.0 }
 0x240   :  { %2831 = vmatpush.bf16.msra.mxu0 %v4402_v51  ;;  %3078 = vmatpush.bf16.msra.mxu3 %v4883_v46  ;;  %v2324_v51 = vld [vmem:[%s5218_s8] sm:$0x7] }
 0x241   :  { %v2226_v55 = vpack.c.bf16 %v2223_v50, %v2220_v58  ;;  %v2327_v52 = vperm.slane %v2324_v51, 1  ;;  %v2326_v50 = vperm.slane %v2324_v51, 0 }
 0x243   :  { %2738 = vmatmul.bf16.vlgmr.msra.gmra.mxu1 %v2226_v55  ;;  %2780 = vmatmul.bf16.vlgmr.msrb.gmra.mxu0 %v2226_v55 }
 0x244   :  { %2822 = vmatmul.bf16.vlgmr.msrb.gmra.mxu3 %v2226_v55  ;;  %v2214_v4 = vpop.f32.mrf.mxu3  ;;  %2832 = vmatpush.bf16.msra.mxu0 %v4390_v60  ;;  %v4879_v55 = vld [vmem:[#allocation9 + $0x80] sm:$0xff] }
 0x245   :  { %v2215_v18 = vadd.f32 %v2214_v4, %v2201_v13  ;;  %3047 = vmatpush.bf16.msra.mxu1 %v4870_v30  ;;  %3079 = vmatpush.bf16.msra.mxu3 %v4882_v29 }
 0x247   :  { %v2221_v24 = vmax.f32 %v2215_v18, 0.0  ;;  %v2328_v18 = vperm.slane %v2324_v51, 2 }
 0x248   :  { %2833 = vmatpush.bf16.msra.mxu0 %v4378_v7 }
 0x249   :  { %3048 = vmatpush.bf16.msra.mxu1 %v4869_v32  ;;  %3080 = vmatpush.bf16.msra.mxu3 %v4881_v49 }
 0x24c   :  { %v2216_v19 = vpop.f32.mrf.mxu3  ;;  %2834 = vmatpush.bf16.msra.mxu0 %v4366_v25 }
 0x24d   :  { %v2217_v22 = vadd.f32 %v2216_v19, %v2203_v17  ;;  %3049 = vmatpush.bf16.msra.mxu1 %v4868_v34  ;;  %3081 = vmatpush.bf16.msra.mxu3 %v4880_v54 }
 0x24f   :  { %v2224_v5 = vmax.f32 %v2217_v22, 0.0 }
 0x250   :  { %2835 = vmatpush.bf16.msra.mxu0 %v4354_v21 }
 0x251   :  { %v2227_v26 = vpack.c.bf16 %v2224_v5, %v2221_v24  ;;  %3050 = vmatpush.bf16.msra.mxu1 %v4867_v36  ;;  %3082 = vmatpush.bf16.msra.mxu3 %v4879_v55 }
 0x253   :  { %2752 = vmatmul.bf16.vlgmr.msra.gmra.mxu2 %v2227_v26  ;;  %2794 = vmatmul.bf16.vlgmr.msrb.gmra.mxu1 %v2227_v26 }
 0x254   :  { %2836 = vmatmul.bf16.vlgmr.msra.gmra.mxu0 %v2227_v26  ;;  %3061 = vmatpush.bf16.msra.mxu2 %v4878_v27 }
 0x258   :  { %3062 = vmatpush.bf16.msra.mxu2 %v4877_v28 }
 0x25c   :  { %3063 = vmatpush.bf16.msra.mxu2 %v4876_v31 }
 0x260   :  { %3064 = vmatpush.bf16.msra.mxu2 %v4875_v33 }
 0x263   :  { %2808 = vmatmul.bf16.vlgmr.msrb.gmra.mxu2 %v5192_v20  ;;  %v4866_v20 = vld [vmem:[#allocation9 + $0x18] sm:$0xff] }
 0x264   :  { %3065 = vmatpush.bf16.msra.mxu2 %v4874_v35  ;;  %3051 = vmatpush.bf16.msra.mxu1 %v4866_v20  ;;  %v4898_v20 = vld [vmem:[%s5220_s10] ss:$0 sm:$0xff] }
 0x268   :  { %3066 = vmatpush.bf16.msra.mxu2 %v4873_v59  ;;  %3052 = vmatpush.bf16.msra.mxu1 %v4865_v0 }
 0x26c   :  { %3067 = vmatpush.bf16.msra.mxu2 %v4872_v38  ;;  %3053 = vmatpush.bf16.msra.mxu1 %v4864_v40 }
 0x270   :  { %3068 = vmatpush.bf16.msra.mxu2 %v4871_v1  ;;  %3054 = vmatpush.bf16.msra.mxu1 %v4863_v44 }
 0x2b0   :  { %v2725_v37 = vpop.f32.mrf.mxu0 }
 0x2b1   :  { %v2726_v7 = vadd.f32 %v2725_v37, %v2326_v50  ;;  %v3089_v37 = vlaneseq }
 0x2b3   :  { %v3090_v39 = vand.u32 127, %v3089_v37 }
 0x2b5   :  { %vm3091_vm0 = vcmp.lt.s32.totalorder %v3090_v39, 6 }
 0x2b6   :  { %v2767_v47 = vpop.f32.mrf.mxu3 }
 0x2b7   :  { %v2768_v57 = vadd.f32 %v2767_v47, %v2327_v52 }
 0x2b8   :  { %v2727_v42 = vpop.f32.mrf.mxu0 }
 0x2b9   :  { %v2728_v8 = vadd.f32 %v2727_v42, %v2326_v50 }
 0x2be   :  { %v2769_v56 = vpop.f32.mrf.mxu3 }
 0x2bf   :  { %v2770_v60 = vadd.f32 %v2769_v56, %v2327_v52 }
 0x2c0   :  { %v2739_v43 = vpop.f32.mrf.mxu1  ;;  %v2781_v48 = vpop.f32.mrf.mxu0 }
 0x2c1   :  { %v2782_v61 = vadd.f32 %v2781_v48, %v2768_v57  ;;  %v2740_v9 = vadd.f32 %v2739_v43, %v2726_v7 }
 0x2c7   :  { %v2823_v19 = vpop.f32.mrf.mxu3 }
 0x2c8   :  { %v2741_v45 = vpop.f32.mrf.mxu1  ;;  %v2783_v58 = vpop.f32.mrf.mxu0 }
 0x2c9   :  { %v2784_v2 = vadd.f32 %v2783_v58, %v2770_v60  ;;  %v2742_v6 = vadd.f32 %v2741_v45, %v2728_v8 }
 0x2cf   :  { %v2825_v28 = vpop.f32.mrf.mxu3 }
 0x2d0   :  { %v2795_v53 = vpop.f32.mrf.mxu1 }
 0x2d1   :  { %v2796_v3 = vadd.f32 %v2795_v53, %v2782_v61  ;;  %v2837_v22 = vpop.f32.mrf.mxu0 }
 0x2d3   :  { %v2843_v14 = vmax.f32 %v2796_v3, 0.0 }
 0x2d6   :  { %v2753_v63 = vpop.f32.mrf.mxu2 }
 0x2d7   :  { %v2754_v11 = vadd.f32 %v2753_v63, %v2740_v9 }
 0x2d8   :  { %v2797_v4 = vpop.f32.mrf.mxu1 }
 0x2d9   :  { %v2798_v62 = vadd.f32 %v2797_v4, %v2784_v2  ;;  %v2842_v15 = vmax.f32 %v2754_v11, 0.0  ;;  %v2839_v32 = vpop.f32.mrf.mxu0 }
 0x2db   :  { %v2846_v10 = vmax.f32 %v2798_v62, 0.0 }
 0x2dd   :  { %v2849_v25 = vpack.c.bf16 %v2846_v10, %v2843_v14 }
 0x2de   :  { %v2755_v12 = vpop.f32.mrf.mxu2 }
 0x2df   :  { %v2756_v13 = vadd.f32 %v2755_v12, %v2742_v6  ;;  %3069 = vmatmul.bf16.vlgmr.msra.gmra.mxu2 %v2849_v25 }
 0x2e1   :  { %v2845_v16 = vmax.f32 %v2756_v13, 0.0 }
 0x2e3   :  { %v2848_v17 = vpack.c.bf16 %v2845_v16, %v2842_v15 }
 0x2e5   :  { %3055 = vmatmul.bf16.vlgmr.msra.gmra.mxu1 %v2848_v17 }
 0x2e6   :  { %v2809_v21 = vpop.f32.mrf.mxu2 }
 0x2e7   :  { %v2810_v24 = vadd.f32 %v2809_v21, %v2328_v18 }
 0x2e9   :  { %v2824_v5 = vadd.f32 %v2823_v19, %v2810_v24 }
 0x2eb   :  { %v2838_v30 = vadd.f32 %v2837_v22, %v2824_v5 }
 0x2ed   :  { %v2844_v34 = vmax.f32 %v2838_v30, 0.0 }
 0x2ee   :  { %v2811_v26 = vpop.f32.mrf.mxu2 }
 0x2ef   :  { %v2812_v27 = vadd.f32 %v2811_v26, %v2328_v18 }
 0x2f1   :  { %v2826_v31 = vadd.f32 %v2825_v28, %v2812_v27 }
 0x2f3   :  { %v2840_v33 = vadd.f32 %v2839_v32, %v2826_v31 }
 0x2f5   :  { %v2847_v35 = vmax.f32 %v2840_v33, 0.0 }
 0x2f7   :  { %v2850_v36 = vpack.c.bf16 %v2847_v35, %v2844_v34 }
 0x2f9   :  { %3083 = vmatmul.bf16.vlgmr.msra.gmra.mxu3 %v2850_v36 }
 0x362   :  { %v3056_v59 = vpop.f32.mrf.mxu1  ;;  %v3070_v0 = vpop.f32.mrf.mxu2 }
 0x363   :  { %v3057_v38 = vadd.f32 %v4898_v20, %v3056_v59 }
 0x365   :  { %v3071_v1 = vadd.f32 %v3070_v0, %v3057_v38 }
 0x36a   :  { %v3058_v40 = vpop.f32.mrf.mxu1  ;;  %v3072_v23 = vpop.f32.mrf.mxu2 }
 0x36b   :  { %v3059_v43 = vadd.f32 %v4898_v20, %v3058_v40 }
 0x36d   :  { %v3073_v46 = vadd.f32 %v3072_v23, %v3059_v43 }
 0x37c   :  { %v3084_v41 = vpop.f32.mrf.mxu3 }
 0x37d   :  { %v3085_v42 = vadd.f32 %v3084_v41, %v3071_v1 }
 0x37f   :  { %v3092_v44 = vsel %vm3091_vm0, %v3085_v42, -inf }
 0x380   :  { %3094 = vmax.xlane.f32.xlu0 %v3092_v44 }
 0x384   :  { %v3086_v47 = vpop.f32.mrf.mxu3 }
 0x385   :  { %v3087_v45 = vadd.f32 %v3086_v47, %v3073_v46 }
 0x387   :  { %v3093_v29 = vsel %vm3091_vm0, %v3087_v45, -inf }
 0x388   :  { %3096 = vmax.xlane.f32.xlu0 %v3093_v29 }
 0x3f3   :  { %v3095_v48 = vpop.xlane.xlu0 %3094 }
 0x3f4   :  { %v3098_v49 = vsub.f32 %v3092_v44, %v3095_v48 }
 0x3f6   :  { %v3100_v51 = vmul.f32 1.442695, %v3098_v49 }
 0x3f8   :  { %4899 = vpow2.f32 %v3100_v51 }
 0x3fb   :  { %v3097_v52 = vpop.xlane.xlu0 %3096 }
 0x3fc   :  { %v3099_v53 = vsub.f32 %v3093_v29, %v3097_v52 }
 0x3fe   :  { %v4900_v54 = vpop.eup %4899  ;;  %v3102_v56 = vmul.f32 1.442695, %v3099_v53 }
 0x3ff   :  { %3104 = vadd.xlane.f32.xlu1 %v4900_v54 }
 0x400   :  { %4901 = vpow2.f32 %v3102_v56 }
 0x406   :  { %v4902_v57 = vpop.eup %4901 }
 0x407   :  { %3106 = vadd.xlane.f32.xlu1 %v4902_v57 }
 0x472   :  { %v3105_v58 = vpop.xlane.xlu1 %3104 }
 0x473   :  { %4903 = vrcp.f32 %v3105_v58 }
 0x479   :  { %v4904_v50 = vpop.eup %4903 }
 0x47a   :  { %v3110_v60 = vmul.f32 %v4904_v50, %v3105_v58  ;;  %v3107_v61 = vpop.xlane.xlu1 %3106 }
 0x47b   :  { %4905 = vrcp.f32 %v3107_v61 }
 0x47c   :  { %v3112_v55 = vsub.f32 2.0, %v3110_v60 }
 0x47e   :  { %v3114_v63 = vmul.f32 %v4904_v50, %v3112_v55 }
 0x480   :  { %v3116_v2 = vmul.f32 %v4900_v54, %v3114_v63 }
 0x481   :  { %v4906_v3 = vpop.eup %4905 }
 0x482   :  { %3118 = vst [vmem:[%s5221_s11] sm:$0xff] %v3116_v2  ;;  %v3111_v4 = vmul.f32 %v4906_v3, %v3107_v61 }
 0x484   :  { %v3113_v7 = vsub.f32 2.0, %v3111_v4 }
 0x486   :  { %v3115_v62 = vmul.f32 %v4906_v3, %v3113_v7 }
 0x488   :  { %v3117_v8 = vmul.f32 %v4902_v57, %v3115_v62 }
 0x48a   :  { %3119 = vst [vmem:[%s5221_s11 + $0x8] sm:$0xff] %v3117_v8 }
 0x48b   :  { %3124 = vsyncpa [#allocation3], 1 }
 0x48c   :  { %3125 = vsyncpa [#allocation5], 1 }
 0x48d   :  { %3126 = vsyncpa [#allocation8], 1 }

</bundles_post_ra>
